<compile_context>
chip_gen: v6e
topology: v6e:2x2x1
jax: 0.10.0
libtpu: 0.0.40
codegen_flags: <defaults>
</compile_context>

<pallas_src>
import functools

import numpy as np
import jax
import jax.numpy as jnp
from jax.experimental import pallas as pl
from jax.experimental.pallas import tpu as pltpu


# ----------------------------------------------------------------------------
# Config
# ----------------------------------------------------------------------------
class Args:
    ts_size = 16
    mask_size = 2
    num_masks = 2
    z_dim = 8
    hidden_dim = 32
    num_layer = 2


WIDE = 128  # packed output lane width (x_inter in [0:H), x_dec in [H:H+Z))


def _round_up(x, m):
    return ((x + m - 1) // m) * m


# ----------------------------------------------------------------------------
# Fused Pallas kernel.
#
# Layout: every sequence tensor is kept flat as (b * rows, feat) where `rows`
# is the 8-aligned padded RNN-batch dim (l_pad for the encoder, t_pad for the
# decoder).  Row block [t*rows : (t+1)*rows] holds recurrence step t, so all
# in-kernel slices are sublane-aligned.  Pad rows are zeroed out of the result
# by the zero-padded columns of the block-diagonal seq_inter weight.
# ----------------------------------------------------------------------------
def _fused_kernel(*refs, b, l_pad, t_pad, num_layer):
    n_in = 4 + 3 * num_layer + 3 + 3 * num_layer + 2
    in_refs = refs[:n_in]
    out_ref = refs[n_in]

    it = iter(in_refs)
    x_ref, keep_ref, ttri_ref, jmat_ref = next(it), next(it), next(it), next(it)
    enc = [(next(it), next(it), next(it)) for _ in range(num_layer)]
    wcomb_ref, sblk_ref, bconst_ref = next(it), next(it), next(it)
    dec = [(next(it), next(it), next(it)) for _ in range(num_layer)]
    dfw_ref, dfb_ref = next(it), next(it)

    f32 = jnp.float32
    H = enc[0][1].shape[0]

    def rnn_stack(x_in, layers, rows):
        # One hoisted input-projection matmul per layer; the serial recurrence
        # only carries h @ whh + tanh and stays entirely in vregs (no scratch).
        cur = x_in
        for (w_ref, u_ref, b_ref) in layers:
            xproj = (jnp.dot(cur, w_ref[...], preferred_element_type=f32)
                     + b_ref[...])
            u = u_ref[...]
            h = jnp.tanh(xproj[0:rows, :])                 # h_{-1} = 0
            hs = [h]
            for t in range(1, b):                          # small & static -> unrolled
                s = t * rows
                h = jnp.tanh(xproj[s:s + rows, :]
                             + jnp.dot(h, u, preferred_element_type=f32))
                hs.append(h)
            cur = jnp.concatenate(hs, axis=0)
        return cur

    # ---- mask_it as a 0/1 block-diagonal selection matmul -------------------
    # pos[l] = (# visible positions <= l in the same batch row) - 1, computed
    # with one dot against a precomputed block-triangular matrix; the selection
    # matrix is then two compares against a precomputed iota table.
    keep = keep_ref[...]                                          # (8, b*ts)
    pos = jnp.dot(keep, ttri_ref[...], preferred_element_type=f32) - 1.0
    pos_row = pos[0:1, :]
    keep_row = keep[0:1, :]
    sel = jnp.logical_and(pos_row == jmat_ref[...], keep_row > 0.5)
    x_vis = jnp.dot(sel.astype(f32), x_ref[...],
                    preferred_element_type=f32)                   # (b*l_pad, Z)

    # ---- encoder RNN ---------------------------------------------------------
    r_enc = rnn_stack(x_vis, enc, l_pad)                          # (b*l_pad, H)

    # ---- enc_fc o seq_inter o feat_inter folded into two dots ----------------
    # Wcomb = Wef^T @ Wfi^T (widened to 128 lanes, cols [0:H)); Sblk is the
    # block-diagonal padded W_seq; Bconst absorbs all three biases.
    g = jnp.dot(r_enc, wcomb_ref[...], preferred_element_type=f32)      # (b*l_pad, 128)
    x_mid = (jnp.dot(sblk_ref[...], g, preferred_element_type=f32)
             + bconst_ref[...])                                          # (b*t_pad, 128)

    # ---- decoder RNN + dec_fc, single unmasked lane-dense store --------------
    # decoder layer-1 W_ih is zero-padded to accept the 128-wide x_mid; dec_fc
    # weight/bias are placed into output lanes [H:H+Z) so the packed slab is
    # just x_mid + dec_fc_output.
    r_dec = rnn_stack(x_mid, dec, t_pad)                          # (b*t_pad, H)
    out_ref[...] = x_mid + (jnp.dot(r_dec, dfw_ref[...],
                                    preferred_element_type=f32)
                            + dfb_ref[...])


def _full_spec(shape):
    nd = len(shape)
    return pl.BlockSpec(shape, lambda i, _nd=nd: (0,) * _nd)


# ----------------------------------------------------------------------------
# Parameters (PyTorch layout) + one-time preparation for the kernel
# ----------------------------------------------------------------------------
def _uniform(key, shape, bound):
    return jax.random.uniform(key, shape, jnp.float32, -bound, bound)


def init_params(key, args):
    H, Z, L = args.hidden_dim, args.z_dim, args.num_layer
    ts = args.ts_size
    l_vis = ts - args.num_masks * args.mask_size
    kb = 1.0 / np.sqrt(H)
    keys = iter(jax.random.split(key, 64))

    def rnn_layers(in_dim):
        layers = []
        d = in_dim
        for _ in range(L):
            layers.append((
                _uniform(next(keys), (H, d), kb),   # weight_ih
                _uniform(next(keys), (H, H), kb),   # weight_hh
                _uniform(next(keys), (H,), kb),     # bias_ih
                _uniform(next(keys), (H,), kb),     # bias_hh
            ))
            d = H
        return layers

    return {
        "enc_rnn": rnn_layers(Z),
        "enc_fc": (_uniform(next(keys), (H, H), kb), _uniform(next(keys), (H,), kb)),
        "seq_inter": (_uniform(next(keys), (ts, l_vis), 1.0 / np.sqrt(l_vis)),
                      _uniform(next(keys), (ts,), 1.0 / np.sqrt(l_vis))),
        "feat_inter": (_uniform(next(keys), (H, H), kb), _uniform(next(keys), (H,), kb)),
        "dec_rnn": rnn_layers(H),
        "dec_fc": (_uniform(next(keys), (Z, H), kb), _uniform(next(keys), (Z,), kb)),
    }


def prepare_params(params, args, batch):
    """One-time: transpose weights, combine biases, fold the linear stages,
    build the block-diagonal interpolator, gather tables and widened weights."""
    H, Z, ts = args.hidden_dim, args.z_dim, args.ts_size
    l_vis = ts - args.num_masks * args.mask_size
    l_pad = _round_up(max(l_vis, 8), 8)
    t_pad = _round_up(max(ts, 8), 8)
    b = batch
    assert H + Z <= WIDE

    def npa(a):
        return np.asarray(a, np.float64)

    flat = []

    # --- mask-gather constant tables ---------------------------------------
    BT, BR = b * ts, b * l_pad
    rr = np.arange(BT)[:, None]
    cc = np.arange(BT)[None, :]
    t_tri = (((rr // ts) == (cc // ts)) & (rr <= cc)).astype(np.float64)  # (BT, BT)
    rg = np.arange(BR)[:, None]
    cg = np.arange(BT)[None, :]
    same_b = (rg // l_pad) == (cg // ts)
    j_mat = np.where(same_b, (rg % l_pad).astype(np.float64), -1.0)       # (BR, BT)
    flat += [t_tri, j_mat]

    # --- encoder RNN layers --------------------------------------------------
    for (wih, whh, bih, bhh) in params["enc_rnn"]:
        flat += [npa(wih).T, npa(whh).T, (npa(bih) + npa(bhh)).reshape(1, -1)]

    # --- enc_fc o seq_inter o feat_inter fold --------------------------------
    wef, bef = npa(params["enc_fc"][0]), npa(params["enc_fc"][1])
    wseq, bseq = npa(params["seq_inter"][0]), npa(params["seq_inter"][1])
    wfi, bfi = npa(params["feat_inter"][0]), npa(params["feat_inter"][1])

    wcomb = wef.T @ wfi.T                                   # (H, H)
    wcomb_wide = np.zeros((H, WIDE))
    wcomb_wide[:, :H] = wcomb

    b_ef = bef @ wfi.T                                      # bef pushed through feat_inter
    rowsum_fi = wfi.sum(axis=1)                             # 1_H @ Wfi^T
    bconst = (wseq.sum(axis=1)[:, None] * b_ef[None, :]
              + bseq[:, None] * rowsum_fi[None, :]
              + bfi[None, :])                               # (ts, H)
    bconst_tiled = np.zeros((b * t_pad, WIDE))
    for bi in range(b):
        bconst_tiled[bi * t_pad: bi * t_pad + ts, :H] = bconst

    wseq_pad = np.zeros((t_pad, l_pad))
    wseq_pad[:ts, :l_vis] = wseq
    sblk = np.zeros((b * t_pad, b * l_pad))
    for bi in range(b):
        sblk[bi * t_pad:(bi + 1) * t_pad, bi * l_pad:(bi + 1) * l_pad] = wseq_pad
    flat += [wcomb_wide, sblk, bconst_tiled]

    # --- decoder RNN layers (layer 0 W_ih padded to accept the 128-wide input)
    for li, (wih, whh, bih, bhh) in enumerate(params["dec_rnn"]):
        w_t = npa(wih).T
        if li == 0:
            w_pad = np.zeros((WIDE, H))
            w_pad[:w_t.shape[0], :] = w_t
            w_t = w_pad
        flat += [w_t, npa(whh).T, (npa(bih) + npa(bhh)).reshape(1, -1)]

    # --- dec_fc placed into output lanes [H : H+Z) ----------------------------
    wdf, bdf = npa(params["dec_fc"][0]), npa(params["dec_fc"][1])
    wdf_wide = np.zeros((H, WIDE))
    wdf_wide[:, H:H + Z] = wdf.T
    bdf_wide = np.zeros((1, WIDE))
    bdf_wide[0, H:H + Z] = bdf
    flat += [wdf_wide, bdf_wide]

    return tuple(jnp.asarray(a, jnp.float32) for a in flat)


# ----------------------------------------------------------------------------
# Forward (fully jittable): tiny mask convert + single fused kernel
# ----------------------------------------------------------------------------
def build_forward(args, batch):
    H, Z, ts = args.hidden_dim, args.z_dim, args.ts_size
    l_vis = ts - args.num_masks * args.mask_size
    l_pad = _round_up(max(l_vis, 8), 8)
    t_pad = _round_up(max(ts, 8), 8)
    b = batch

    kernel = functools.partial(_fused_kernel, b=b, l_pad=l_pad, t_pad=t_pad,
                               num_layer=args.num_layer)

    def forward(x, masks, kparams):
        x_flat = x.astype(jnp.float32).reshape(b * ts, Z)
        # keep = 1 where visible; broadcast to 8 sublanes so the in-kernel
        # cumsum-matmul has a tile-aligned LHS.
        keep = jnp.broadcast_to(
            jnp.logical_not(masks).astype(jnp.float32).reshape(1, b * ts),
            (8, b * ts))

        flat_inputs = (x_flat, keep) + tuple(kparams)
        packed = pl.pallas_call(
            kernel,
            out_shape=jax.ShapeDtypeStruct((b * t_pad, WIDE), jnp.float32),
            grid=(1,),
            in_specs=[_full_spec(a.shape) for a in flat_inputs],
            out_specs=_full_spec((b * t_pad, WIDE)),
            compiler_params=pltpu.CompilerParams(
                dimension_semantics=("arbitrary",)),
        )(*flat_inputs)

        packed = packed.reshape(b, t_pad, WIDE)
        x_inter = packed[:, :ts, :H]
        x_dec = packed[:, :ts, H:H + Z]
        return x_inter, x_dec, masks

    return jax.jit(forward)


# ----------------------------------------------------------------------------
# Pure-JAX reference (no Pallas) for correctness checking
# ----------------------------------------------------------------------------
def mask_it(x_np, masks_np):
    b, l, f = x_np.shape
    return x_np[~masks_np].reshape(b, -1, f)


def _ref_linear(x2d, w, b):
    return jnp.dot(x2d, w.T, precision=jax.lax.Precision.HIGHEST) + b


def _ref_rnn(x3d, layers):
    out = x3d
    for (wih, whh, bih, bhh) in layers:
        L, N, _ = out.shape
        H = whh.shape[0]
        h = jnp.zeros((N, H), jnp.float32)
        ys = []
        for t in range(L):
            h = jnp.tanh(
                jnp.dot(out[t], wih.T, precision=jax.lax.Precision.HIGHEST)
                + jnp.dot(h, whh.T, precision=jax.lax.Precision.HIGHEST)
                + bih + bhh
            )
            ys.append(h)
        out = jnp.stack(ys, axis=0)
    return out


def reference_forward(x, masks, params, args):
    b, l, f = x.shape
    H, Z, ts = args.hidden_dim, args.z_dim, args.ts_size
    x_vis = jnp.asarray(mask_it(np.asarray(x), np.asarray(masks)), jnp.float32)
    l_vis = x_vis.shape[1]
    h = _ref_rnn(x_vis, params["enc_rnn"])
    h = _ref_linear(h.reshape(-1, H), *params["enc_fc"]).reshape(b, l_vis, H)
    ht = jnp.transpose(h, (0, 2, 1)).reshape(b * H, l_vis)
    ht = _ref_linear(ht, *params["seq_inter"]).reshape(b, H, ts)
    h2 = jnp.transpose(ht, (0, 2, 1))
    x_inter = _ref_linear(h2.reshape(-1, H), *params["feat_inter"]).reshape(b, ts, H)
    d = _ref_rnn(x_inter, params["dec_rnn"])
    x_dec = _ref_linear(d.reshape(-1, H), *params["dec_fc"]).reshape(b, ts, Z)
    return x_inter, x_dec


# ----------------------------------------------------------------------------
if __name__ == "__main__":
    args = Args()
    b = 4
    key = jax.random.PRNGKey(0)
    k_param, k_x = jax.random.split(key)

    params = init_params(k_param, args)
    kparams = prepare_params(params, args, b)
    forward = build_forward(args, b)

    x = jax.random.normal(k_x, (b, args.ts_size, args.z_dim), jnp.float32)

    # Deterministic masks: each row masks num_masks contiguous blocks of
    # mask_size, so every row has exactly total_mask_size masked positions.
    masks_np = np.zeros((b, args.ts_size), dtype=bool)
    for i in range(b):
        for m in range(args.num_masks):
            start = i * args.mask_size + m * 8
            masks_np[i, start:start + args.mask_size] = True
    masks = jnp.asarray(masks_np)

    x_inter, x_dec, masks_out = forward(x, masks, kparams)
    jax.block_until_ready((x_inter, x_dec, masks_out))

    # Sanity check vs. pure-JAX reference.
    r_inter, r_dec = reference_forward(x, masks, params, args)
    np.testing.assert_allclose(np.asarray(x_inter), np.asarray(r_inter),
                               rtol=2e-2, atol=2e-2)
    np.testing.assert_allclose(np.asarray(x_dec), np.asarray(r_dec),
                               rtol=2e-2, atol=2e-2)

    print("KERNEL_OK")
</pallas_src>

<mosaic_0001>
module attributes {stable_mosaic.version = 11 : i64} {
  func.func @_fused_kernel(%arg0: i32, %arg1: memref<64x8xf32, #tpu.memory_space<vmem>>, %arg2: memref<8x64xf32, #tpu.memory_space<vmem>>, %arg3: memref<64x64xf32, #tpu.memory_space<vmem>>, %arg4: memref<64x64xf32, #tpu.memory_space<vmem>>, %arg5: memref<8x32xf32, #tpu.memory_space<vmem>>, %arg6: memref<32x32xf32, #tpu.memory_space<vmem>>, %arg7: memref<1x32xf32, #tpu.memory_space<vmem>>, %arg8: memref<32x32xf32, #tpu.memory_space<vmem>>, %arg9: memref<32x32xf32, #tpu.memory_space<vmem>>, %arg10: memref<1x32xf32, #tpu.memory_space<vmem>>, %arg11: memref<32x128xf32, #tpu.memory_space<vmem>>, %arg12: memref<64x64xf32, #tpu.memory_space<vmem>>, %arg13: memref<64x128xf32, #tpu.memory_space<vmem>>, %arg14: memref<128x32xf32, #tpu.memory_space<vmem>>, %arg15: memref<32x32xf32, #tpu.memory_space<vmem>>, %arg16: memref<1x32xf32, #tpu.memory_space<vmem>>, %arg17: memref<32x32xf32, #tpu.memory_space<vmem>>, %arg18: memref<32x32xf32, #tpu.memory_space<vmem>>, %arg19: memref<1x32xf32, #tpu.memory_space<vmem>>, %arg20: memref<32x128xf32, #tpu.memory_space<vmem>>, %arg21: memref<1x128xf32, #tpu.memory_space<vmem>>, %arg22: memref<64x128xf32, #tpu.memory_space<vmem>>) attributes {dimension_semantics = [#tpu.dimension_semantics<arbitrary>], iteration_bounds = array<i64: 1>, scalar_prefetch = 0 : i64, scratch_operands = 0 : i64, tpu.core_type = #tpu.core_type<tc>, window_params = [{pipeline_mode = #tpu.pipeline_mode<synchronous>, transform_indices = @transform_0, window_bounds = array<i64: 64, 8>}, {pipeline_mode = #tpu.pipeline_mode<synchronous>, transform_indices = @transform_1, window_bounds = array<i64: 8, 64>}, {pipeline_mode = #tpu.pipeline_mode<synchronous>, transform_indices = @transform_2, window_bounds = array<i64: 64, 64>}, {pipeline_mode = #tpu.pipeline_mode<synchronous>, transform_indices = @transform_3, window_bounds = array<i64: 64, 64>}, {pipeline_mode = #tpu.pipeline_mode<synchronous>, transform_indices = @transform_4, window_bounds = array<i64: 8, 32>}, {pipeline_mode = #tpu.pipeline_mode<synchronous>, transform_indices = @transform_5, window_bounds = array<i64: 32, 32>}, {pipeline_mode = #tpu.pipeline_mode<synchronous>, transform_indices = @transform_6, window_bounds = array<i64: 1, 32>}, {pipeline_mode = #tpu.pipeline_mode<synchronous>, transform_indices = @transform_7, window_bounds = array<i64: 32, 32>}, {pipeline_mode = #tpu.pipeline_mode<synchronous>, transform_indices = @transform_8, window_bounds = array<i64: 32, 32>}, {pipeline_mode = #tpu.pipeline_mode<synchronous>, transform_indices = @transform_9, window_bounds = array<i64: 1, 32>}, {pipeline_mode = #tpu.pipeline_mode<synchronous>, transform_indices = @transform_10, window_bounds = array<i64: 32, 128>}, {pipeline_mode = #tpu.pipeline_mode<synchronous>, transform_indices = @transform_11, window_bounds = array<i64: 64, 64>}, {pipeline_mode = #tpu.pipeline_mode<synchronous>, transform_indices = @transform_12, window_bounds = array<i64: 64, 128>}, {pipeline_mode = #tpu.pipeline_mode<synchronous>, transform_indices = @transform_13, window_bounds = array<i64: 128, 32>}, {pipeline_mode = #tpu.pipeline_mode<synchronous>, transform_indices = @transform_14, window_bounds = array<i64: 32, 32>}, {pipeline_mode = #tpu.pipeline_mode<synchronous>, transform_indices = @transform_15, window_bounds = array<i64: 1, 32>}, {pipeline_mode = #tpu.pipeline_mode<synchronous>, transform_indices = @transform_16, window_bounds = array<i64: 32, 32>}, {pipeline_mode = #tpu.pipeline_mode<synchronous>, transform_indices = @transform_17, window_bounds = array<i64: 32, 32>}, {pipeline_mode = #tpu.pipeline_mode<synchronous>, transform_indices = @transform_18, window_bounds = array<i64: 1, 32>}, {pipeline_mode = #tpu.pipeline_mode<synchronous>, transform_indices = @transform_19, window_bounds = array<i64: 32, 128>}, {pipeline_mode = #tpu.pipeline_mode<synchronous>, transform_indices = @transform_20, window_bounds = array<i64: 1, 128>}, {pipeline_mode = #tpu.pipeline_mode<synchronous>, transform_indices = @transform_21, window_bounds = array<i64: 64, 128>}]} {
    %c0 = arith.constant 0 : index
    %c0_0 = arith.constant 0 : index
    %0 = vector.load %arg2[%c0, %c0_0] : memref<8x64xf32, #tpu.memory_space<vmem>>, vector<8x64xf32>
    %c0_1 = arith.constant 0 : index
    %c0_2 = arith.constant 0 : index
    %1 = vector.load %arg3[%c0_1, %c0_2] : memref<64x64xf32, #tpu.memory_space<vmem>>, vector<64x64xf32>
    %cst = arith.constant dense<0.000000e+00> : vector<8x64xf32>
    %2 = tpu.matmul %0, %1, %cst {dimension_numbers = #tpu.dot_dimension_numbers<[1], [0], [0], [1], [0, 0, 1, 1], [], []>} : vector<8x64xf32>, vector<64x64xf32>, vector<8x64xf32> -> vector<8x64xf32>
    %cst_3 = arith.constant 1.000000e+00 : f32
    %3 = vector.broadcast %cst_3 : f32 to vector<8x64xf32>
    %4 = arith.subf %2, %3 : vector<8x64xf32>
    %5 = vector.extract_strided_slice %4 {offsets = [0, 0], sizes = [1, 64], strides = [1, 1]} : vector<8x64xf32> to vector<1x64xf32>
    %6 = vector.extract_strided_slice %0 {offsets = [0, 0], sizes = [1, 64], strides = [1, 1]} : vector<8x64xf32> to vector<1x64xf32>
    %c0_4 = arith.constant 0 : index
    %c0_5 = arith.constant 0 : index
    %7 = vector.load %arg4[%c0_4, %c0_5] : memref<64x64xf32, #tpu.memory_space<vmem>>, vector<64x64xf32>
    %8 = vector.broadcast %5 : vector<1x64xf32> to vector<64x64xf32>
    %9 = arith.cmpf oeq, %8, %7 : vector<64x64xf32>
    %cst_6 = arith.constant 5.000000e-01 : f32
    %10 = vector.broadcast %cst_6 : f32 to vector<1x64xf32>
    %11 = arith.cmpf ogt, %6, %10 : vector<1x64xf32>
    %12 = vector.broadcast %11 : vector<1x64xi1> to vector<64x64xi1>
    %13 = arith.andi %9, %12 : vector<64x64xi1>
    %14 = arith.extui %13 : vector<64x64xi1> to vector<64x64xi32>
    %15 = arith.sitofp %14 : vector<64x64xi32> to vector<64x64xf32>
    %c0_7 = arith.constant 0 : index
    %c0_8 = arith.constant 0 : index
    %16 = vector.load %arg1[%c0_7, %c0_8] : memref<64x8xf32, #tpu.memory_space<vmem>>, vector<64x8xf32>
    %cst_9 = arith.constant dense<0.000000e+00> : vector<64x8xf32>
    %17 = tpu.matmul %15, %16, %cst_9 {dimension_numbers = #tpu.dot_dimension_numbers<[1], [0], [0], [1], [0, 0, 1, 1], [], []>} : vector<64x64xf32>, vector<64x8xf32>, vector<64x8xf32> -> vector<64x8xf32>
    %c0_10 = arith.constant 0 : index
    %c0_11 = arith.constant 0 : index
    %18 = vector.load %arg5[%c0_10, %c0_11] : memref<8x32xf32, #tpu.memory_space<vmem>>, vector<8x32xf32>
    %cst_12 = arith.constant dense<0.000000e+00> : vector<64x32xf32>
    %19 = tpu.matmul %17, %18, %cst_12 {dimension_numbers = #tpu.dot_dimension_numbers<[1], [0], [0], [1], [0, 0, 1, 1], [], []>} : vector<64x8xf32>, vector<8x32xf32>, vector<64x32xf32> -> vector<64x32xf32>
    %c0_13 = arith.constant 0 : index
    %c0_14 = arith.constant 0 : index
    %20 = vector.load %arg7[%c0_13, %c0_14] : memref<1x32xf32, #tpu.memory_space<vmem>>, vector<1x32xf32>
    %21 = vector.broadcast %20 : vector<1x32xf32> to vector<64x32xf32>
    %22 = arith.addf %19, %21 : vector<64x32xf32>
    %c0_15 = arith.constant 0 : index
    %c0_16 = arith.constant 0 : index
    %23 = vector.load %arg6[%c0_15, %c0_16] : memref<32x32xf32, #tpu.memory_space<vmem>>, vector<32x32xf32>
    %24 = vector.extract_strided_slice %22 {offsets = [0, 0], sizes = [16, 32], strides = [1, 1]} : vector<64x32xf32> to vector<16x32xf32>
    %25 = math.tanh %24 : vector<16x32xf32>
    %26 = vector.extract_strided_slice %22 {offsets = [16, 0], sizes = [16, 32], strides = [1, 1]} : vector<64x32xf32> to vector<16x32xf32>
    %cst_17 = arith.constant dense<0.000000e+00> : vector<16x32xf32>
    %27 = tpu.matmul %25, %23, %cst_17 {dimension_numbers = #tpu.dot_dimension_numbers<[1], [0], [0], [1], [0, 0, 1, 1], [], []>} : vector<16x32xf32>, vector<32x32xf32>, vector<16x32xf32> -> vector<16x32xf32>
    %28 = arith.addf %26, %27 : vector<16x32xf32>
    %29 = math.tanh %28 : vector<16x32xf32>
    %30 = vector.extract_strided_slice %22 {offsets = [32, 0], sizes = [16, 32], strides = [1, 1]} : vector<64x32xf32> to vector<16x32xf32>
    %cst_18 = arith.constant dense<0.000000e+00> : vector<16x32xf32>
    %31 = tpu.matmul %29, %23, %cst_18 {dimension_numbers = #tpu.dot_dimension_numbers<[1], [0], [0], [1], [0, 0, 1, 1], [], []>} : vector<16x32xf32>, vector<32x32xf32>, vector<16x32xf32> -> vector<16x32xf32>
    %32 = arith.addf %30, %31 : vector<16x32xf32>
    %33 = math.tanh %32 : vector<16x32xf32>
    %34 = vector.extract_strided_slice %22 {offsets = [48, 0], sizes = [16, 32], strides = [1, 1]} : vector<64x32xf32> to vector<16x32xf32>
    %cst_19 = arith.constant dense<0.000000e+00> : vector<16x32xf32>
    %35 = tpu.matmul %33, %23, %cst_19 {dimension_numbers = #tpu.dot_dimension_numbers<[1], [0], [0], [1], [0, 0, 1, 1], [], []>} : vector<16x32xf32>, vector<32x32xf32>, vector<16x32xf32> -> vector<16x32xf32>
    %36 = arith.addf %34, %35 : vector<16x32xf32>
    %37 = math.tanh %36 : vector<16x32xf32>
    %38 = tpu.concatenate %25, %29, %33, %37 in 0 : vector<16x32xf32>, vector<16x32xf32>, vector<16x32xf32>, vector<16x32xf32> -> vector<64x32xf32>
    %c0_20 = arith.constant 0 : index
    %c0_21 = arith.constant 0 : index
    %39 = vector.load %arg8[%c0_20, %c0_21] : memref<32x32xf32, #tpu.memory_space<vmem>>, vector<32x32xf32>
    %cst_22 = arith.constant dense<0.000000e+00> : vector<64x32xf32>
    %40 = tpu.matmul %38, %39, %cst_22 {dimension_numbers = #tpu.dot_dimension_numbers<[1], [0], [0], [1], [0, 0, 1, 1], [], []>} : vector<64x32xf32>, vector<32x32xf32>, vector<64x32xf32> -> vector<64x32xf32>
    %c0_23 = arith.constant 0 : index
    %c0_24 = arith.constant 0 : index
    %41 = vector.load %arg10[%c0_23, %c0_24] : memref<1x32xf32, #tpu.memory_space<vmem>>, vector<1x32xf32>
    %42 = vector.broadcast %41 : vector<1x32xf32> to vector<64x32xf32>
    %43 = arith.addf %40, %42 : vector<64x32xf32>
    %c0_25 = arith.constant 0 : index
    %c0_26 = arith.constant 0 : index
    %44 = vector.load %arg9[%c0_25, %c0_26] : memref<32x32xf32, #tpu.memory_space<vmem>>, vector<32x32xf32>
    %45 = vector.extract_strided_slice %43 {offsets = [0, 0], sizes = [16, 32], strides = [1, 1]} : vector<64x32xf32> to vector<16x32xf32>
    %46 = math.tanh %45 : vector<16x32xf32>
    %47 = vector.extract_strided_slice %43 {offsets = [16, 0], sizes = [16, 32], strides = [1, 1]} : vector<64x32xf32> to vector<16x32xf32>
    %cst_27 = arith.constant dense<0.000000e+00> : vector<16x32xf32>
    %48 = tpu.matmul %46, %44, %cst_27 {dimension_numbers = #tpu.dot_dimension_numbers<[1], [0], [0], [1], [0, 0, 1, 1], [], []>} : vector<16x32xf32>, vector<32x32xf32>, vector<16x32xf32> -> vector<16x32xf32>
    %49 = arith.addf %47, %48 : vector<16x32xf32>
    %50 = math.tanh %49 : vector<16x32xf32>
    %51 = vector.extract_strided_slice %43 {offsets = [32, 0], sizes = [16, 32], strides = [1, 1]} : vector<64x32xf32> to vector<16x32xf32>
    %cst_28 = arith.constant dense<0.000000e+00> : vector<16x32xf32>
    %52 = tpu.matmul %50, %44, %cst_28 {dimension_numbers = #tpu.dot_dimension_numbers<[1], [0], [0], [1], [0, 0, 1, 1], [], []>} : vector<16x32xf32>, vector<32x32xf32>, vector<16x32xf32> -> vector<16x32xf32>
    %53 = arith.addf %51, %52 : vector<16x32xf32>
    %54 = math.tanh %53 : vector<16x32xf32>
    %55 = vector.extract_strided_slice %43 {offsets = [48, 0], sizes = [16, 32], strides = [1, 1]} : vector<64x32xf32> to vector<16x32xf32>
    %cst_29 = arith.constant dense<0.000000e+00> : vector<16x32xf32>
    %56 = tpu.matmul %54, %44, %cst_29 {dimension_numbers = #tpu.dot_dimension_numbers<[1], [0], [0], [1], [0, 0, 1, 1], [], []>} : vector<16x32xf32>, vector<32x32xf32>, vector<16x32xf32> -> vector<16x32xf32>
    %57 = arith.addf %55, %56 : vector<16x32xf32>
    %58 = math.tanh %57 : vector<16x32xf32>
    %59 = tpu.concatenate %46, %50, %54, %58 in 0 : vector<16x32xf32>, vector<16x32xf32>, vector<16x32xf32>, vector<16x32xf32> -> vector<64x32xf32>
    %c0_30 = arith.constant 0 : index
    %c0_31 = arith.constant 0 : index
    %60 = vector.load %arg11[%c0_30, %c0_31] : memref<32x128xf32, #tpu.memory_space<vmem>>, vector<32x128xf32>
    %cst_32 = arith.constant dense<0.000000e+00> : vector<64x128xf32>
    %61 = tpu.matmul %59, %60, %cst_32 {dimension_numbers = #tpu.dot_dimension_numbers<[1], [0], [0], [1], [0, 0, 1, 1], [], []>} : vector<64x32xf32>, vector<32x128xf32>, vector<64x128xf32> -> vector<64x128xf32>
    %c0_33 = arith.constant 0 : index
    %c0_34 = arith.constant 0 : index
    %62 = vector.load %arg12[%c0_33, %c0_34] : memref<64x64xf32, #tpu.memory_space<vmem>>, vector<64x64xf32>
    %cst_35 = arith.constant dense<0.000000e+00> : vector<64x128xf32>
    %63 = tpu.matmul %62, %61, %cst_35 {dimension_numbers = #tpu.dot_dimension_numbers<[1], [0], [0], [1], [0, 0, 1, 1], [], []>} : vector<64x64xf32>, vector<64x128xf32>, vector<64x128xf32> -> vector<64x128xf32>
    %c0_36 = arith.constant 0 : index
    %c0_37 = arith.constant 0 : index
    %64 = vector.load %arg13[%c0_36, %c0_37] : memref<64x128xf32, #tpu.memory_space<vmem>>, vector<64x128xf32>
    %65 = arith.addf %63, %64 : vector<64x128xf32>
    %c0_38 = arith.constant 0 : index
    %c0_39 = arith.constant 0 : index
    %66 = vector.load %arg14[%c0_38, %c0_39] : memref<128x32xf32, #tpu.memory_space<vmem>>, vector<128x32xf32>
    %cst_40 = arith.constant dense<0.000000e+00> : vector<64x32xf32>
    %67 = tpu.matmul %65, %66, %cst_40 {dimension_numbers = #tpu.dot_dimension_numbers<[1], [0], [0], [1], [0, 0, 1, 1], [], []>} : vector<64x128xf32>, vector<128x32xf32>, vector<64x32xf32> -> vector<64x32xf32>
    %c0_41 = arith.constant 0 : index
    %c0_42 = arith.constant 0 : index
    %68 = vector.load %arg16[%c0_41, %c0_42] : memref<1x32xf32, #tpu.memory_space<vmem>>, vector<1x32xf32>
    %69 = vector.broadcast %68 : vector<1x32xf32> to vector<64x32xf32>
    %70 = arith.addf %67, %69 : vector<64x32xf32>
    %c0_43 = arith.constant 0 : index
    %c0_44 = arith.constant 0 : index
    %71 = vector.load %arg15[%c0_43, %c0_44] : memref<32x32xf32, #tpu.memory_space<vmem>>, vector<32x32xf32>
    %72 = vector.extract_strided_slice %70 {offsets = [0, 0], sizes = [16, 32], strides = [1, 1]} : vector<64x32xf32> to vector<16x32xf32>
    %73 = math.tanh %72 : vector<16x32xf32>
    %74 = vector.extract_strided_slice %70 {offsets = [16, 0], sizes = [16, 32], strides = [1, 1]} : vector<64x32xf32> to vector<16x32xf32>
    %cst_45 = arith.constant dense<0.000000e+00> : vector<16x32xf32>
    %75 = tpu.matmul %73, %71, %cst_45 {dimension_numbers = #tpu.dot_dimension_numbers<[1], [0], [0], [1], [0, 0, 1, 1], [], []>} : vector<16x32xf32>, vector<32x32xf32>, vector<16x32xf32> -> vector<16x32xf32>
    %76 = arith.addf %74, %75 : vector<16x32xf32>
    %77 = math.tanh %76 : vector<16x32xf32>
    %78 = vector.extract_strided_slice %70 {offsets = [32, 0], sizes = [16, 32], strides = [1, 1]} : vector<64x32xf32> to vector<16x32xf32>
    %cst_46 = arith.constant dense<0.000000e+00> : vector<16x32xf32>
    %79 = tpu.matmul %77, %71, %cst_46 {dimension_numbers = #tpu.dot_dimension_numbers<[1], [0], [0], [1], [0, 0, 1, 1], [], []>} : vector<16x32xf32>, vector<32x32xf32>, vector<16x32xf32> -> vector<16x32xf32>
    %80 = arith.addf %78, %79 : vector<16x32xf32>
    %81 = math.tanh %80 : vector<16x32xf32>
    %82 = vector.extract_strided_slice %70 {offsets = [48, 0], sizes = [16, 32], strides = [1, 1]} : vector<64x32xf32> to vector<16x32xf32>
    %cst_47 = arith.constant dense<0.000000e+00> : vector<16x32xf32>
    %83 = tpu.matmul %81, %71, %cst_47 {dimension_numbers = #tpu.dot_dimension_numbers<[1], [0], [0], [1], [0, 0, 1, 1], [], []>} : vector<16x32xf32>, vector<32x32xf32>, vector<16x32xf32> -> vector<16x32xf32>
    %84 = arith.addf %82, %83 : vector<16x32xf32>
    %85 = math.tanh %84 : vector<16x32xf32>
    %86 = tpu.concatenate %73, %77, %81, %85 in 0 : vector<16x32xf32>, vector<16x32xf32>, vector<16x32xf32>, vector<16x32xf32> -> vector<64x32xf32>
    %c0_48 = arith.constant 0 : index
    %c0_49 = arith.constant 0 : index
    %87 = vector.load %arg17[%c0_48, %c0_49] : memref<32x32xf32, #tpu.memory_space<vmem>>, vector<32x32xf32>
    %cst_50 = arith.constant dense<0.000000e+00> : vector<64x32xf32>
    %88 = tpu.matmul %86, %87, %cst_50 {dimension_numbers = #tpu.dot_dimension_numbers<[1], [0], [0], [1], [0, 0, 1, 1], [], []>} : vector<64x32xf32>, vector<32x32xf32>, vector<64x32xf32> -> vector<64x32xf32>
    %c0_51 = arith.constant 0 : index
    %c0_52 = arith.constant 0 : index
    %89 = vector.load %arg19[%c0_51, %c0_52] : memref<1x32xf32, #tpu.memory_space<vmem>>, vector<1x32xf32>
    %90 = vector.broadcast %89 : vector<1x32xf32> to vector<64x32xf32>
    %91 = arith.addf %88, %90 : vector<64x32xf32>
    %c0_53 = arith.constant 0 : index
    %c0_54 = arith.constant 0 : index
    %92 = vector.load %arg18[%c0_53, %c0_54] : memref<32x32xf32, #tpu.memory_space<vmem>>, vector<32x32xf32>
    %93 = vector.extract_strided_slice %91 {offsets = [0, 0], sizes = [16, 32], strides = [1, 1]} : vector<64x32xf32> to vector<16x32xf32>
    %94 = math.tanh %93 : vector<16x32xf32>
    %95 = vector.extract_strided_slice %91 {offsets = [16, 0], sizes = [16, 32], strides = [1, 1]} : vector<64x32xf32> to vector<16x32xf32>
    %cst_55 = arith.constant dense<0.000000e+00> : vector<16x32xf32>
    %96 = tpu.matmul %94, %92, %cst_55 {dimension_numbers = #tpu.dot_dimension_numbers<[1], [0], [0], [1], [0, 0, 1, 1], [], []>} : vector<16x32xf32>, vector<32x32xf32>, vector<16x32xf32> -> vector<16x32xf32>
    %97 = arith.addf %95, %96 : vector<16x32xf32>
    %98 = math.tanh %97 : vector<16x32xf32>
    %99 = vector.extract_strided_slice %91 {offsets = [32, 0], sizes = [16, 32], strides = [1, 1]} : vector<64x32xf32> to vector<16x32xf32>
    %cst_56 = arith.constant dense<0.000000e+00> : vector<16x32xf32>
    %100 = tpu.matmul %98, %92, %cst_56 {dimension_numbers = #tpu.dot_dimension_numbers<[1], [0], [0], [1], [0, 0, 1, 1], [], []>} : vector<16x32xf32>, vector<32x32xf32>, vector<16x32xf32> -> vector<16x32xf32>
    %101 = arith.addf %99, %100 : vector<16x32xf32>
    %102 = math.tanh %101 : vector<16x32xf32>
    %103 = vector.extract_strided_slice %91 {offsets = [48, 0], sizes = [16, 32], strides = [1, 1]} : vector<64x32xf32> to vector<16x32xf32>
    %cst_57 = arith.constant dense<0.000000e+00> : vector<16x32xf32>
    %104 = tpu.matmul %102, %92, %cst_57 {dimension_numbers = #tpu.dot_dimension_numbers<[1], [0], [0], [1], [0, 0, 1, 1], [], []>} : vector<16x32xf32>, vector<32x32xf32>, vector<16x32xf32> -> vector<16x32xf32>
    %105 = arith.addf %103, %104 : vector<16x32xf32>
    %106 = math.tanh %105 : vector<16x32xf32>
    %107 = tpu.concatenate %94, %98, %102, %106 in 0 : vector<16x32xf32>, vector<16x32xf32>, vector<16x32xf32>, vector<16x32xf32> -> vector<64x32xf32>
    %c0_58 = arith.constant 0 : index
    %c0_59 = arith.constant 0 : index
    %108 = vector.load %arg20[%c0_58, %c0_59] : memref<32x128xf32, #tpu.memory_space<vmem>>, vector<32x128xf32>
    %cst_60 = arith.constant dense<0.000000e+00> : vector<64x128xf32>
    %109 = tpu.matmul %107, %108, %cst_60 {dimension_numbers = #tpu.dot_dimension_numbers<[1], [0], [0], [1], [0, 0, 1, 1], [], []>} : vector<64x32xf32>, vector<32x128xf32>, vector<64x128xf32> -> vector<64x128xf32>
    %c0_61 = arith.constant 0 : index
    %c0_62 = arith.constant 0 : index
    %110 = vector.load %arg21[%c0_61, %c0_62] : memref<1x128xf32, #tpu.memory_space<vmem>>, vector<1x128xf32>
    %111 = vector.broadcast %110 : vector<1x128xf32> to vector<64x128xf32>
    %112 = arith.addf %109, %111 : vector<64x128xf32>
    %113 = arith.addf %65, %112 : vector<64x128xf32>
    %c0_63 = arith.constant 0 : index
    %c0_64 = arith.constant 0 : index
    %114 = vector.load %arg22[%c0_63, %c0_64] : memref<64x128xf32, #tpu.memory_space<vmem>>, vector<64x128xf32>
    tpu.vector_store %arg22[%c0_63, %c0_64], %113 {strides = array<i32>} : memref<64x128xf32, #tpu.memory_space<vmem>>, vector<64x128xf32>,
    return
  }
  func.func @transform_0(%arg0: i32) -> (i32, i32) {
    %c0_i32 = arith.constant 0 : i32
    %c0_i32_0 = arith.constant 0 : i32
    %c0_i32_1 = arith.constant 0 : i32
    return %c0_i32, %c0_i32_0 : i32, i32
  }
  func.func @transform_1(%arg0: i32) -> (i32, i32) {
    %c0_i32 = arith.constant 0 : i32
    %c0_i32_0 = arith.constant 0 : i32
    %c0_i32_1 = arith.constant 0 : i32
    return %c0_i32, %c0_i32_0 : i32, i32
  }
  func.func @transform_2(%arg0: i32) -> (i32, i32) {
    %c0_i32 = arith.constant 0 : i32
    %c0_i32_0 = arith.constant 0 : i32
    %c0_i32_1 = arith.constant 0 : i32
    return %c0_i32, %c0_i32_0 : i32, i32
  }
  func.func @transform_3(%arg0: i32) -> (i32, i32) {
    %c0_i32 = arith.constant 0 : i32
    %c0_i32_0 = arith.constant 0 : i32
    %c0_i32_1 = arith.constant 0 : i32
    return %c0_i32, %c0_i32_0 : i32, i32
  }
  func.func @transform_4(%arg0: i32) -> (i32, i32) {
    %c0_i32 = arith.constant 0 : i32
    %c0_i32_0 = arith.constant 0 : i32
    %c0_i32_1 = arith.constant 0 : i32
    return %c0_i32, %c0_i32_0 : i32, i32
  }
  func.func @transform_5(%arg0: i32) -> (i32, i32) {
    %c0_i32 = arith.constant 0 : i32
    %c0_i32_0 = arith.constant 0 : i32
    %c0_i32_1 = arith.constant 0 : i32
    return %c0_i32, %c0_i32_0 : i32, i32
  }
  func.func @transform_6(%arg0: i32) -> (i32, i32) {
    %c0_i32 = arith.constant 0 : i32
    %c0_i32_0 = arith.constant 0 : i32
    %c0_i32_1 = arith.constant 0 : i32
    return %c0_i32, %c0_i32_0 : i32, i32
  }
  func.func @transform_7(%arg0: i32) -> (i32, i32) {
    %c0_i32 = arith.constant 0 : i32
    %c0_i32_0 = arith.constant 0 : i32
    %c0_i32_1 = arith.constant 0 : i32
    return %c0_i32, %c0_i32_0 : i32, i32
  }
  func.func @transform_8(%arg0: i32) -> (i32, i32) {
    %c0_i32 = arith.constant 0 : i32
    %c0_i32_0 = arith.constant 0 : i32
    %c0_i32_1 = arith.constant 0 : i32
    return %c0_i32, %c0_i32_0 : i32, i32
  }
  func.func @transform_9(%arg0: i32) -> (i32, i32) {
    %c0_i32 = arith.constant 0 : i32
    %c0_i32_0 = arith.constant 0 : i32
    %c0_i32_1 = arith.constant 0 : i32
    return %c0_i32, %c0_i32_0 : i32, i32
  }
  func.func @transform_10(%arg0: i32) -> (i32, i32) {
    %c0_i32 = arith.constant 0 : i32
    %c0_i32_0 = arith.constant 0 : i32
    %c0_i32_1 = arith.constant 0 : i32
    return %c0_i32, %c0_i32_0 : i32, i32
  }
  func.func @transform_11(%arg0: i32) -> (i32, i32) {
    %c0_i32 = arith.constant 0 : i32
    %c0_i32_0 = arith.constant 0 : i32
    %c0_i32_1 = arith.constant 0 : i32
    return %c0_i32, %c0_i32_0 : i32, i32
  }
  func.func @transform_12(%arg0: i32) -> (i32, i32) {
    %c0_i32 = arith.constant 0 : i32
    %c0_i32_0 = arith.constant 0 : i32
    %c0_i32_1 = arith.constant 0 : i32
    return %c0_i32, %c0_i32_0 : i32, i32
  }
  func.func @transform_13(%arg0: i32) -> (i32, i32) {
    %c0_i32 = arith.constant 0 : i32
    %c0_i32_0 = arith.constant 0 : i32
    %c0_i32_1 = arith.constant 0 : i32
    return %c0_i32, %c0_i32_0 : i32, i32
  }
  func.func @transform_14(%arg0: i32) -> (i32, i32) {
    %c0_i32 = arith.constant 0 : i32
    %c0_i32_0 = arith.constant 0 : i32
    %c0_i32_1 = arith.constant 0 : i32
    return %c0_i32, %c0_i32_0 : i32, i32
  }
  func.func @transform_15(%arg0: i32) -> (i32, i32) {
    %c0_i32 = arith.constant 0 : i32
    %c0_i32_0 = arith.constant 0 : i32
    %c0_i32_1 = arith.constant 0 : i32
    return %c0_i32, %c0_i32_0 : i32, i32
  }
  func.func @transform_16(%arg0: i32) -> (i32, i32) {
    %c0_i32 = arith.constant 0 : i32
    %c0_i32_0 = arith.constant 0 : i32
    %c0_i32_1 = arith.constant 0 : i32
    return %c0_i32, %c0_i32_0 : i32, i32
  }
  func.func @transform_17(%arg0: i32) -> (i32, i32) {
    %c0_i32 = arith.constant 0 : i32
    %c0_i32_0 = arith.constant 0 : i32
    %c0_i32_1 = arith.constant 0 : i32
    return %c0_i32, %c0_i32_0 : i32, i32
  }
  func.func @transform_18(%arg0: i32) -> (i32, i32) {
    %c0_i32 = arith.constant 0 : i32
    %c0_i32_0 = arith.constant 0 : i32
    %c0_i32_1 = arith.constant 0 : i32
    return %c0_i32, %c0_i32_0 : i32, i32
  }
  func.func @transform_19(%arg0: i32) -> (i32, i32) {
    %c0_i32 = arith.constant 0 : i32
    %c0_i32_0 = arith.constant 0 : i32
    %c0_i32_1 = arith.constant 0 : i32
    return %c0_i32, %c0_i32_0 : i32, i32
  }
  func.func @transform_20(%arg0: i32) -> (i32, i32) {
    %c0_i32 = arith.constant 0 : i32
    %c0_i32_0 = arith.constant 0 : i32
    %c0_i32_1 = arith.constant 0 : i32
    return %c0_i32, %c0_i32_0 : i32, i32
  }
  func.func @transform_21(%arg0: i32) -> (i32, i32) {
    %c0_i32 = arith.constant 0 : i32
    %c0_i32_0 = arith.constant 0 : i32
    %c0_i32_1 = arith.constant 0 : i32
    return %c0_i32, %c0_i32_0 : i32, i32
  }
}

</mosaic_0001>

<bundles_post_ra>
// kernel: forward.1
= control target key start
LH: loop header
LB: loop body
LE: loop exit
PB: predicated region body
PF: predicated region fallthrough
CT: control target
= control target key end

     0   :  { %s3886_s0 = inlined_call_operand.vmem [shape: f32[64,8], index: 0, kind: input, shape index: {}]   ;;  %s3887_s1 = inlined_call_operand.vmem [shape: f32[8,64], index: 1, kind: input, shape index: {}]   ;;  %s3888_s2 = inlined_call_operand.vmem [shape: f32[64,64], index: 2, kind: input, shape index: {}]   ;;  %s3889_s3 = inlined_call_operand.vmem [shape: f32[64,64], index: 3, kind: input, shape index: {}]   ;;  %s3890_s4 = inlined_call_operand.vmem [shape: f32[8,32], index: 4, kind: input, shape index: {}]   ;;  %s3891_s5 = inlined_call_operand.hbm [shape: f32[32,32], index: 5, kind: input, shape index: {}]   ;;  %s3892_s6 = inlined_call_operand.vmem [shape: f32[1,32], index: 6, kind: input, shape index: {}]   ;;  %s3893_s7 = inlined_call_operand.hbm [shape: f32[32,32], index: 7, kind: input, shape index: {}]   ;;  %s3894_s8 = inlined_call_operand.hbm [shape: f32[32,32], index: 8, kind: input, shape index: {}]   ;;  %s3895_s9 = inlined_call_operand.vmem [shape: f32[1,32], index: 9, kind: input, shape index: {}]   ;;  %s3896_s10 = inlined_call_operand.hbm [shape: f32[32,128], index: 10, kind: input, shape index: {}]   ;;  %s3897_s11 = inlined_call_operand.vmem [shape: f32[64,64], index: 11, kind: input, shape index: {}]   ;;  %s3898_s12 = inlined_call_operand.vmem [shape: f32[64,128], index: 12, kind: input, shape index: {}]   ;;  %s3899_s13 = inlined_call_operand.vmem [shape: f32[128,32], index: 13, kind: input, shape index: {}]   ;;  %s3900_s14 = inlined_call_operand.hbm [shape: f32[32,32], index: 14, kind: input, shape index: {}]   ;;  %s3901_s15 = inlined_call_operand.vmem [shape: f32[1,32], index: 15, kind: input, shape index: {}]   ;;  %s3902_s16 = inlined_call_operand.hbm [shape: f32[32,32], index: 16, kind: input, shape index: {}]   ;;  %s3903_s17 = inlined_call_operand.hbm [shape: f32[32,32], index: 17, kind: input, shape index: {}]   ;;  %s3904_s18 = inlined_call_operand.vmem [shape: f32[1,32], index: 18, kind: input, shape index: {}]   ;;  %s3905_s19 = inlined_call_operand.hbm [shape: f32[32,128], index: 19, kind: input, shape index: {}]   ;;  %s3906_s20 = inlined_call_operand.vmem [shape: f32[1,128], index: 20, kind: input, shape index: {}]   ;;  %s3907_s21 = inlined_call_operand.vmem [shape: f32[64,128], index: 21, kind: output, shape index: {}]  }
   0x1   :  { %3911 = sst [smem:[#allocation20_spill]] %s3886_s0 }
   0x2   :  { %3912 = sst [smem:[#allocation21_spill]] %s3887_s1 }
   0x3   :  { %3913 = sst [smem:[#allocation22_spill]] %s3888_s2 }
   0x4   :  { %3914 = sst [smem:[#allocation23_spill]] %s3889_s3 }
   0x5   :  { %3915 = sst [smem:[#allocation24_spill]] %s3890_s4 }
   0x6   :  { %3916 = sst [smem:[#allocation25_spill]] %s3891_s5 }
   0x7   :  { %26 = vsyncpa [#allocation3], 0 }
   0x8   :  { %27 = vsyncpa [#allocation5], 0 }
   0x9   :  { %28 = vsyncpa [#allocation8], 0 }
   0xa   :  { %29 = vsyncpa [#allocation11], 0 }
   0xb   :  { %30 = vsyncpa [#allocation14], 0  ;;  %s3294_s2 = smov [#allocation4]   ;;  %s3295_s26 = smov [#allocation7]  }
   0xc   :  { %s60_s25 = sshll.u32 %s3294_s2, 4  ;;  %s86_s27 = sshll.u32 %s3295_s26, 4  ;;  %s61_s25 = int_to_ptr.vmem [resolvable:$true] %s60_s25  ;;  %s87_s27 = int_to_ptr.vmem [resolvable:$true] %s86_s27 }
   0xd   :  { %s3132_s3 = scalar_lea.vmem %s61_s25, 512  ;;  %p3137_p1 = scmp.lt.s32.totalorder %s61_s25, %s61_s25 }
   0xe   :  { %p3133_p0 = scmp.ne.s32.totalorder %s61_s25, %s3132_s3  ;;  %p3138_p2 = scmp.lt.s32.totalorder %s3132_s3, %s3132_s3 }
  0x10   :  { %p3139_p3 = por %p3138_p2, %p3137_p1 }
  0x12   :  { %p3140_p4 = pnand %p3139_p3, %p3133_p0 }
  0x14   :  { %3143 = shalt.err (!%p3140_p4)
}
  0x15   :  { %s3296_s28 = smov 128   ;;  %s3297_s29 = smov 8  }
  0x16   :  { %66 = dma.hbm_to_vmem [thread:$0]  %s3893_s7, 512, %s61_s25, [#allocation5], %s3296_s28, %s3296_s28, %s3297_s29  }
  0x17   :  { %s3152_s30 = scalar_lea.vmem %s87_s27, 512  ;;  %p3157_p6 = scmp.lt.s32.totalorder %s87_s27, %s87_s27 }
  0x18   :  { %p3153_p5 = scmp.ne.s32.totalorder %s87_s27, %s3152_s30  ;;  %p3158_p7 = scmp.lt.s32.totalorder %s3152_s30, %s3152_s30 }
  0x1a   :  { %p3159_p8 = por %p3158_p7, %p3157_p6 }
  0x1c   :  { %p3160_p9 = pnand %p3159_p8, %p3153_p5 }
  0x1e   :  { %3163 = shalt.err (!%p3160_p9)
}
  0x1f   :  { %92 = dma.hbm_to_vmem [thread:$0]  %s3896_s10, 512, %s87_s27, [#allocation8], %s3296_s28, %s3296_s28, %s3297_s29  }
  0x20   :  { %s3298_s23 = smov [#allocation10]   ;;  %s3299_s24 = smov [#allocation2]  }
  0x21   :  { %s118_s1 = sshll.u32 %s3298_s23, 4  ;;  %s46_s2 = sshll.u32 %s3299_s24, 4  ;;  %s119_s1 = int_to_ptr.vmem [resolvable:$true] %s118_s1  ;;  %s47_s2 = int_to_ptr.vmem [resolvable:$true] %s46_s2 }
  0x22   :  { %s3172_s7 = scalar_lea.vmem %s119_s1, 512  ;;  %p3177_p11 = scmp.lt.s32.totalorder %s119_s1, %s119_s1 }
  0x23   :  { %p3173_p10 = scmp.ne.s32.totalorder %s119_s1, %s3172_s7  ;;  %p3178_p12 = scmp.lt.s32.totalorder %s3172_s7, %s3172_s7 }
  0x25   :  { %p3179_p13 = por %p3178_p12, %p3177_p11 }
  0x27   :  { %p3180_p0 = pnand %p3179_p13, %p3173_p10 }
  0x29   :  { %3183 = shalt.err (!%p3180_p0)
}
  0x2a   :  { %124 = dma.hbm_to_vmem [thread:$0]  %s3902_s16, 512, %s119_s1, [#allocation11], %s3296_s28, %s3296_s28, %s3297_s29  }
  0x2b   :  { %s3192_s10 = scalar_lea.vmem %s47_s2, 512  ;;  %p3197_p2 = scmp.lt.s32.totalorder %s47_s2, %s47_s2 }
  0x2c   :  { %p3193_p1 = scmp.ne.s32.totalorder %s47_s2, %s3192_s10  ;;  %p3198_p3 = scmp.lt.s32.totalorder %s3192_s10, %s3192_s10 }
  0x2e   :  { %p3199_p4 = por %p3198_p3, %p3197_p2 }
  0x30   :  { %p3200_p5 = pnand %p3199_p4, %p3193_p1 }
  0x32   :  { %3203 = shalt.err (!%p3200_p5)
}
  0x33   :  { %s3917_s0 = sld [smem:[#allocation25_spill]]  ;;  %s3300_s4 = smov [#allocation6]  }
  0x34   :  { %s72_s30 = sshll.u32 %s3300_s4, 4  ;;  %s3301_s5 = smov [#allocation9]   ;;  %s73_s30 = int_to_ptr.vmem [resolvable:$true] %s72_s30 }
  0x35   :  { %s104_s22 = sshll.u32 %s3301_s5, 4  ;;  %s3212_s16 = scalar_lea.vmem %s73_s30, 512  ;;  %s105_s22 = int_to_ptr.vmem [resolvable:$true] %s104_s22 }
  0x36   :  { %p3213_p6 = scmp.ne.s32.totalorder %s73_s30, %s3212_s16  ;;  %p3217_p7 = scmp.lt.s32.totalorder %s73_s30, %s73_s30 }
  0x37   :  { %p3218_p8 = scmp.lt.s32.totalorder %s3212_s16, %s3212_s16 }
  0x39   :  { %52 = dma.hbm_to_vmem [thread:$0]  %s3917_s0, 512, %s47_s2, [#allocation3], %s3296_s28, %s3296_s28, %s3297_s29  }
  0x3a   :  { %p3219_p9 = por %p3218_p8, %p3217_p7 }
  0x3c   :  { %p3220_p10 = pnand %p3219_p9, %p3213_p6 }
  0x3e   :  { %3223 = shalt.err (!%p3220_p10)
}
  0x3f   :  { %78 = dma.hbm_to_vmem [thread:$0]  %s3894_s8, 512, %s73_s30, [#allocation5], %s3296_s28, %s3296_s28, %s3297_s29  }
  0x40   :  { %s3232_s24 = scalar_lea.vmem %s105_s22, 512  ;;  %p3237_p12 = scmp.lt.s32.totalorder %s105_s22, %s105_s22 }
  0x41   :  { %p3233_p11 = scmp.ne.s32.totalorder %s105_s22, %s3232_s24  ;;  %p3238_p13 = scmp.lt.s32.totalorder %s3232_s24, %s3232_s24 }
  0x43   :  { %p3239_p0 = por %p3238_p13, %p3237_p12 }
  0x45   :  { %p3240_p1 = pnand %p3239_p0, %p3233_p11 }
  0x47   :  { %3243 = shalt.err (!%p3240_p1)
}
  0x48   :  { %110 = dma.hbm_to_vmem [thread:$0]  %s3900_s14, 512, %s105_s22, [#allocation8], %s3296_s28, %s3296_s28, %s3297_s29  }
  0x49   :  { %s3302_s25 = smov [#allocation12]   ;;  %s3303_s10 = smov [#allocation13]  }
  0x4a   :  { %s130_s26 = sshll.u32 %s3302_s25, 4  ;;  %s144_s27 = sshll.u32 %s3303_s10, 4  ;;  %s131_s26 = int_to_ptr.vmem [resolvable:$true] %s130_s26  ;;  %s145_s27 = int_to_ptr.vmem [resolvable:$true] %s144_s27 }
  0x4b   :  { %s3252_s8 = scalar_lea.vmem %s131_s26, 512  ;;  %p3257_p3 = scmp.lt.s32.totalorder %s131_s26, %s131_s26 }
  0x4c   :  { %p3253_p2 = scmp.ne.s32.totalorder %s131_s26, %s3252_s8  ;;  %p3258_p4 = scmp.lt.s32.totalorder %s3252_s8, %s3252_s8 }
  0x4e   :  { %p3259_p5 = por %p3258_p4, %p3257_p3 }
  0x50   :  { %p3260_p6 = pnand %p3259_p5, %p3253_p2 }
  0x52   :  { %3263 = shalt.err (!%p3260_p6)
}
  0x53   :  { %136 = dma.hbm_to_vmem [thread:$0]  %s3903_s17, 512, %s131_s26, [#allocation11], %s3296_s28, %s3296_s28, %s3297_s29  }
  0x54   :  { %s3272_s14 = scalar_lea.vmem %s145_s27, 512  ;;  %p3277_p8 = scmp.lt.s32.totalorder %s145_s27, %s145_s27 }
  0x55   :  { %p3273_p7 = scmp.ne.s32.totalorder %s145_s27, %s3272_s14  ;;  %p3278_p9 = scmp.lt.s32.totalorder %s3272_s14, %s3272_s14 }
  0x57   :  { %p3279_p10 = por %p3278_p9, %p3277_p8 }
  0x59   :  { %p3280_p11 = pnand %p3279_p10, %p3273_p7 }
  0x5b   :  { %3283 = shalt.err (!%p3280_p11)
}
  0x5c   :  { %150 = dma.hbm_to_vmem [thread:$0]  %s3905_s19, 512, %s145_s27, [#allocation14], %s3296_s28, %s3296_s28, %s3297_s29  }
  0x5d   :  { %3284 = dma.done.wait [#allocation3], 512  }
  0x5e   :  { %3285 = vsyncadd [#allocation3], 4294966784 }
  0x5f   :  { %3286 = dma.done.wait [#allocation5], 1024  }
  0x60   :  { %3287 = vsyncadd [#allocation5], 4294966272 }
  0x61   :  { %3288 = dma.done.wait [#allocation8], 1024  }
  0x62   :  { %3289 = vsyncadd [#allocation8], 4294966272 }
  0x63   :  { %3290 = dma.done.wait [#allocation11], 1024  }
  0x64   :  { %3291 = vsyncadd [#allocation11], 4294966272 }
  0x65   :  { %3292 = dma.done.wait [#allocation14], 512  }
  0x66   :  { %3293 = vsyncadd [#allocation14], 4294966784  ;;  %v3304_v0 = vmov 0.0   ;;  %vm3305_vm0 = vmmov 0   ;;  %s3918_s22 = sld [smem:[#allocation22_spill]]  ;;  %vm186_vm1 = vcmask 523264   ;;  %v269_v19 = vlaneseq }
  0x67   :  { %2700 = vmatprep.subr.mxu0 %v3304_v0  ;;  %2716 = vmatprep.mubr.msk.f32.mxu0 %vm3305_vm0, %v3304_v0  ;;  %s3919_s24 = sld [smem:[#allocation20_spill]]  ;;  %v3306_v22 = vmov 0   ;;  %v590_v53 = vld [vmem:[#allocation2 + $0x18] sm:$0xff]  ;;  %v589_v54 = vld [vmem:[#allocation2 + $0x10] sm:$0xff]  ;;  %v588_v55 = vld [vmem:[#allocation2 + $0x8] sm:$0xff] }
  0x68   :  { %s3920_s23 = sld [smem:[#allocation21_spill]]  ;;  %v270_v20 = vshrl.u32 %v269_v19, 7  ;;  %v587_v56 = vld [vmem:[#allocation2] sm:$0xff]  ;;  %v850_v19 = vld [vmem:[#allocation4 + $0x8] sm:$0xff] }
  0x69   :  { %s3921_s0 = sld [smem:[#allocation24_spill]]  ;;  %v3580_v57 = vld [vmem:[%s3892_s6] ss:$0 sm:$0xff] }
  0x6a   :  { %v271_v21 = vsub.s32 0, %v270_v20  ;;  %s3922_s4 = sld [smem:[#allocation23_spill]]  ;;  %v849_v20 = vld [vmem:[#allocation4] sm:$0xff] }
  0x6c   :  { %v185_v1 = vld [vmem:[%s3918_s22 + $0x38] sm:$0xff]  ;;  %v184_v2 = vld [vmem:[%s3918_s22 + $0x30] sm:$0xff]  ;;  %v183_v3 = vld [vmem:[%s3918_s22 + $0x28] sm:$0xff] }
  0x6d   :  { %2701 = vmatpush3.msra.mxu0 %v185_v1  ;;  %v319_v4 = vld [vmem:[%s3919_s24 + $0x38] sm:$0xff]  ;;  %v318_v5 = vld [vmem:[%s3919_s24 + $0x30] sm:$0xff]  ;;  %v182_v6 = vld [vmem:[%s3918_s22 + $0x20] sm:$0xff] }
  0x6e   :  { %2702 = vmatprep.subr.mxu0 %v3304_v0  ;;  %2719 = vmatprep.subr.mxu1 %v319_v4  ;;  %v317_v7 = vld [vmem:[%s3919_s24 + $0x28] sm:$0xff]  ;;  %v181_v8 = vld [vmem:[%s3918_s22 + $0x18] sm:$0xff]  ;;  %v316_v9 = vld [vmem:[%s3919_s24 + $0x20] sm:$0xff] }
  0x6f   :  { %2703 = vmatpush3.msra.mxu0 %v184_v2  ;;  %2720 = vmatpush3.msra.mxu1 %v319_v4  ;;  %v180_v10 = vld [vmem:[%s3918_s22 + $0x10] sm:$0xff]  ;;  %v179_v11 = vld [vmem:[%s3918_s22 + $0x8] sm:$0xff]  ;;  %v178_v12 = vld [vmem:[%s3918_s22] sm:$0xff] }
  0x70   :  { %2704 = vmatprep.subr.mxu0 %v3304_v0  ;;  %2721 = vmatprep.subr.mxu1 %v318_v5  ;;  %v177_v13 = vld [vmem:[%s3920_s23] sm:$0xff]  ;;  %v315_v14 = vld [vmem:[%s3919_s24 + $0x18] sm:$0xff]  ;;  %v314_v15 = vld [vmem:[%s3919_s24 + $0x10] sm:$0xff] }
  0x71   :  { %2705 = vmatpush3.msra.mxu0 %v183_v3  ;;  %2722 = vmatpush3.msra.mxu1 %v318_v5  ;;  %v313_v16 = vld [vmem:[%s3919_s24 + $0x8] sm:$0xff]  ;;  %v312_v17 = vld [vmem:[%s3919_s24] sm:$0xff]  ;;  %vm281_vm2 = vcmp.gt.f32.partialorder %v177_v13, 0.5  ;;  %v263_v30 = vld [vmem:[%s3922_s4 + $0x10] sm:$0xff] }
  0x72   :  { %2706 = vmatprep.subr.mxu0 %v3304_v0  ;;  %2723 = vmatprep.subr.mxu1 %v317_v7  ;;  %v449_v18 = vld [vmem:[%s3921_s0] sm:$0xff]  ;;  %v282_v23 = vsel %vm281_vm2, 1, %v3306_v22  ;;  %v262_v29 = vld [vmem:[%s3922_s4 + $0x8] sm:$0xff]  ;;  %v264_v32 = vld [vmem:[%s3922_s4 + $0x18] sm:$0xff] }
  0x73   :  { %2707 = vmatpush3.msra.mxu0 %v182_v6  ;;  %2724 = vmatpush3.msra.mxu1 %v317_v7  ;;  %v286_v24 = vrot.slane %v282_v23, %v271_v21  ;;  %v261_v28 = vld [vmem:[%s3922_s4] sm:$0xff]  ;;  %v266_v35 = vld [vmem:[%s3922_s4 + $0x28] sm:$0xff]  ;;  %v267_v37 = vld [vmem:[%s3922_s4 + $0x30] sm:$0xff] }
  0x74   :  { %2708 = vmatprep.subr.mxu0 %v3304_v0  ;;  %2725 = vmatprep.subr.mxu1 %v316_v9  ;;  %v265_v33 = vld [vmem:[%s3922_s4 + $0x20] sm:$0xff]  ;;  %v268_v39 = vld [vmem:[%s3922_s4 + $0x38] sm:$0xff]  ;;  %v973_v22 = vld [vmem:[#allocation6 + $0x10] sm:$0xff] }
  0x75   :  { %2709 = vmatpush3.msra.mxu0 %v181_v8  ;;  %2726 = vmatpush3.msra.mxu1 %v316_v9  ;;  %vm287_vm3 = vcmp.eq.s32.totalorder %v286_v24, 1  ;;  %v852_v6 = vld [vmem:[#allocation4 + $0x18] sm:$0xff]  ;;  %v972_v23 = vld [vmem:[#allocation6 + $0x8] sm:$0xff]  ;;  %v971_v24 = vld [vmem:[#allocation6] sm:$0xff] }
  0x76   :  { %2710 = vmatprep.subr.mxu0 %v3304_v0  ;;  %2727 = vmatprep.subr.mxu1 %v315_v14 }
  0x77   :  { %2711 = vmatpush3.msra.mxu0 %v180_v10  ;;  %2728 = vmatpush3.msra.mxu1 %v315_v14 }
  0x78   :  { %2712 = vmatprep.subr.mxu0 %v3304_v0  ;;  %2729 = vmatprep.subr.mxu1 %v314_v15 }
  0x79   :  { %2713 = vmatpush3.msra.mxu0 %v179_v11  ;;  %2730 = vmatpush3.msra.mxu1 %v314_v15 }
  0x7a   :  { %2714 = vmatprep.subr.mxu0 %v3304_v0  ;;  %2731 = vmatprep.subr.mxu1 %v313_v16 }
  0x7b   :  { %2715 = vmatpush3.msra.mxu0 %v178_v12  ;;  %2732 = vmatpush3.msra.mxu1 %v313_v16 }
  0x7c   :  { %2717 = vmatmul.mubr.msk.f32.vlgmr.msra.gmra.mxu0 %vm186_vm1, %v177_v13  ;;  %2733 = vmatprep.subr.mxu1 %v312_v17 }
  0x7d   :  { %2734 = vmatpush3.msra.mxu1 %v312_v17  ;;  %2747 = vmatprep.subr.mxu0 %v449_v18 }
  0x7e   :  { %3045 = vmatprep.subr.mxu1 %v449_v18  ;;  %2748 = vmatpush3.msra.mxu0 %v449_v18 }
  0x7f   :  { %2772 = vmatprep.subr.mxu0 %v590_v53 }
 0x13c   :  { %v256_v25 = vpop.f32.mrf.mxu0 }
 0x13d   :  { %v2412_v26 = vadd.f32 -1.0, %v256_v25 }
 0x13e   :  { %v2718_v27 = vpop.f32.mrf.mxu0 }
 0x13f   :  { %v272_v31 = vrot.slane %v2412_v26, %v271_v21  ;;  %v974_v21 = vld [vmem:[#allocation6 + $0x18] sm:$0xff] }
 0x141   :  { %vm273_vm4 = vcmp.eq.f32.partialorder %v272_v31, %v261_v28  ;;  %vm274_vm5 = vcmp.eq.f32.partialorder %v272_v31, %v262_v29  ;;  %vm275_vm6 = vcmp.eq.f32.partialorder %v272_v31, %v263_v30  ;;  %vm276_vm8 = vcmp.eq.f32.partialorder %v272_v31, %v264_v32  ;;  %v3604_v29 = vld [vmem:[%s3895_s9] ss:$0 sm:$0xff] }
 0x142   :  { %vm288_vm7 = vmand %vm273_vm4, %vm287_vm3  ;;  %vm277_vm10 = vcmp.eq.f32.partialorder %v272_v31, %v265_v33  ;;  %vm278_vm14 = vcmp.eq.f32.partialorder %v272_v31, %v266_v35  ;;  %vm279_vm15 = vcmp.eq.f32.partialorder %v272_v31, %v267_v37  ;;  %vm280_vm4 = vcmp.eq.f32.partialorder %v272_v31, %v268_v39 }
 0x143   :  { %v2413_v34 = vsel %vm288_vm7, 1.0, %v3304_v0  ;;  %vm289_vm9 = vmand %vm274_vm5, %vm287_vm3 }
 0x144   :  { %2735 = vmatprep.mubr.msk.f32.mxu1 %vm186_vm1, %v2413_v34  ;;  %v2414_v36 = vsel %vm289_vm9, 1.0, %v3304_v0  ;;  %vm290_vm11 = vmand %vm275_vm6, %vm287_vm3  ;;  %vm457_vm6 = vcmask 64512  }
 0x145   :  { %2736 = vmatmul.mubr.msk.f32.vlgmr.msra.gmra.mxu1 %vm186_vm1, %v2414_v36  ;;  %v2415_v38 = vsel %vm290_vm11, 1.0, %v3304_v0  ;;  %vm291_vm12 = vmand %vm276_vm8, %vm287_vm3 }
 0x146   :  { %2738 = vmatprep.mubr.msk.f32.mxu1 %vm186_vm1, %v2415_v38  ;;  %vm292_vm13 = vmand %vm277_vm10, %vm287_vm3  ;;  %3046 = vmatpush3.msra.mxu1 %v449_v18  ;;  %v2416_v40 = vsel %vm291_vm12, 1.0, %v3304_v0  ;;  %v851_v18 = vld [vmem:[#allocation4 + $0x10] sm:$0xff]  ;;  %v1235_v38 = vld [vmem:[#allocation7 + $0x18] sm:$0xff] }
 0x147   :  { %v2417_v41 = vsel %vm292_vm13, 1.0, %v3304_v0  ;;  %vm293_vm0 = vmand %vm278_vm14, %vm287_vm3  ;;  %2761 = vmatprep.subr.mxu1 %v590_v53 }
 0x148   :  { %vm294_vm2 = vmand %vm279_vm15, %vm287_vm3  ;;  %v2418_v42 = vsel %vm293_vm0, 1.0, %v3304_v0 }
 0x149   :  { %2739 = vmatmul.mubr.msk.f32.gmra.mxu1 %vm186_vm1, %v2416_v40  ;;  %v2419_v43 = vsel %vm294_vm2, 1.0, %v3304_v0  ;;  %vm295_vm5 = vmand %vm280_vm4, %vm287_vm3  ;;  %vm593_vm3 = vcmask 261120  }
 0x14a   :  { %2741 = vmatprep.mubr.msk.f32.mxu1 %vm186_vm1, %v2417_v41  ;;  %v2420_v44 = vsel %vm295_vm5, 1.0, %v3304_v0 }
 0x14d   :  { %2742 = vmatmul.mubr.msk.f32.gmra.mxu1 %vm186_vm1, %v2418_v42 }
 0x14e   :  { %2744 = vmatprep.mubr.msk.f32.mxu1 %vm186_vm1, %v2419_v43 }
 0x151   :  { %2745 = vmatmul.mubr.msk.f32.gmra.mxu1 %vm186_vm1, %v2420_v44 }
 0x205   :  { %v2737_v45 = vpop.f32.mrf.mxu1 }
 0x207   :  { %v410_v46 = vpop.f32.mrf.mxu1 }
 0x208   :  { %2749 = vmatprep.mubr.msk.f32.mxu0 %vm457_vm6, %v410_v46 }
 0x209   :  { %v2740_v47 = vpop.f32.mrf.mxu1  ;;  %2750 = vmatmul.mubr.msk.f32.vlgmr.msra.gmra.mxu0 %vm457_vm6, %v2737_v45 }
 0x20a   :  { %2773 = vmatpush3.msra.mxu0 %v590_v53 }
 0x20b   :  { %v420_v48 = vpop.f32.mrf.mxu1  ;;  %2774 = vmatprep.subr.mxu0 %v589_v54 }
 0x20c   :  { %2752 = vmatprep.mubr.msk.f32.mxu0 %vm457_vm6, %v420_v48  ;;  %2775 = vmatpush3.msra.mxu0 %v589_v54 }
 0x20d   :  { %v2743_v49 = vpop.f32.mrf.mxu1  ;;  %2753 = vmatmul.mubr.msk.f32.gmra.mxu0 %vm457_vm6, %v2740_v47  ;;  %2776 = vmatprep.subr.mxu0 %v588_v55 }
 0x20e   :  { %2777 = vmatpush3.msra.mxu0 %v588_v55 }
 0x20f   :  { %v430_v50 = vpop.f32.mrf.mxu1  ;;  %2778 = vmatprep.subr.mxu0 %v587_v56 }
 0x210   :  { %2755 = vmatprep.mubr.msk.f32.mxu1 %vm457_vm6, %v430_v50  ;;  %2779 = vmatpush3.msra.mxu0 %v587_v56 }
 0x211   :  { %v2746_v51 = vpop.f32.mrf.mxu1  ;;  %2756 = vmatmul.mubr.msk.f32.vlgmr.msra.gmra.mxu1 %vm457_vm6, %v2743_v49  ;;  %2794 = vmatprep.subr.mxu0 %v852_v6 }
 0x212   :  { %2762 = vmatpush3.msra.mxu1 %v590_v53 }
 0x213   :  { %v440_v52 = vpop.f32.mrf.mxu1  ;;  %2763 = vmatprep.subr.mxu1 %v589_v54 }
 0x214   :  { %2758 = vmatprep.mubr.msk.f32.mxu1 %vm457_vm6, %v440_v52  ;;  %2764 = vmatpush3.msra.mxu1 %v589_v54 }
 0x215   :  { %2759 = vmatmul.mubr.msk.f32.gmra.mxu1 %vm457_vm6, %v2746_v51  ;;  %2765 = vmatprep.subr.mxu1 %v588_v55 }
 0x216   :  { %2766 = vmatpush3.msra.mxu1 %v588_v55 }
 0x217   :  { %2767 = vmatprep.subr.mxu1 %v587_v56 }
 0x218   :  { %2768 = vmatpush3.msra.mxu1 %v587_v56 }
 0x219   :  { %2783 = vmatprep.subr.mxu1 %v590_v53 }
 0x2c9   :  { %v2751_v58 = vpop.f32.mrf.mxu0 }
 0x2ca   :  { %v554_v59 = vadd.f32 %v2751_v58, %v3580_v57  ;;  %v1232_v58 = vld [vmem:[#allocation7] sm:$0xff] }
 0x2cb   :  { %v548_v60 = vpop.f32.mrf.mxu0 }
 0x2cc   :  { %v549_v61 = vadd.f32 %v3580_v57, %v548_v60 }
 0x2cd   :  { %v2754_v7 = vpop.f32.mrf.mxu0 }
 0x2ce   :  { %3060 = vtanh.f32 %v549_v61  ;;  %v564_v10 = vadd.f32 %v2754_v7, %v3580_v57 }
 0x2cf   :  { %3062 = vtanh.f32 %v554_v59  ;;  %v558_v8 = vpop.f32.mrf.mxu0 }
 0x2d0   :  { %v559_v12 = vadd.f32 %v3580_v57, %v558_v8 }
 0x2d1   :  { %v2757_v62 = vpop.f32.mrf.mxu1 }
 0x2d2   :  { %v574_v63 = vadd.f32 %v2757_v62, %v3580_v57 }
 0x2d3   :  { %v568_v0 = vpop.f32.mrf.mxu1 }
 0x2d4   :  { %v569_v1 = vadd.f32 %v3580_v57, %v568_v0 }
 0x2d5   :  { %v2760_v2 = vpop.f32.mrf.mxu1 }
 0x2d6   :  { %v3587_v3 = vadd.f32 %v2760_v2, %v3580_v57 }
 0x2d7   :  { %v3591_v9 = vpop.f32.mrf.mxu1 }
 0x2d8   :  { %v579_v40 = vadd.f32 %v3580_v57, %v3591_v9  ;;  %v1233_v57 = vld [vmem:[#allocation7 + $0x8] sm:$0xff] }
 0x2db   :  { %v3061_v4 = vpop.eup %3060 }
 0x2dc   :  { %v3063_v5 = vpop.eup %3062  ;;  %2769 = vmatprep.mubr.msk.f32.mxu1 %vm593_vm3, %v3061_v4 }
 0x2dd   :  { %2770 = vmatmul.mubr.msk.f32.vlgmr.msra.gmra.mxu1 %vm593_vm3, %v3063_v5 }
 0x2de   :  { %2784 = vmatpush3.msra.mxu1 %v590_v53 }
 0x2df   :  { %2785 = vmatprep.subr.mxu1 %v589_v54 }
 0x2e0   :  { %2786 = vmatpush3.msra.mxu1 %v589_v54 }
 0x2e1   :  { %2787 = vmatprep.subr.mxu1 %v588_v55 }
 0x2e2   :  { %2788 = vmatpush3.msra.mxu1 %v588_v55 }
 0x2e3   :  { %2789 = vmatprep.subr.mxu1 %v587_v56 }
 0x2e4   :  { %2790 = vmatpush3.msra.mxu1 %v587_v56  ;;  %v1234_v56 = vld [vmem:[#allocation7 + $0x10] sm:$0xff] }
 0x2e5   :  { %2814 = vmatprep.subr.mxu1 %v974_v21 }
 0x39d   :  { %v2771_v11 = vpop.f32.mrf.mxu1 }
 0x39e   :  { %v676_v13 = vadd.f32 %v2771_v11, %v564_v10 }
 0x39f   :  { %v666_v14 = vpop.f32.mrf.mxu1 }
 0x3a0   :  { %v675_v15 = vadd.f32 %v666_v14, %v559_v12 }
 0x3a2   :  { %3064 = vtanh.f32 %v675_v15  ;;  %v1347_v15 = vld [vmem:[%s3897_s11] sm:$0xff] }
 0x3a3   :  { %3066 = vtanh.f32 %v676_v13 }
 0x3af   :  { %v3065_v16 = vpop.eup %3064 }
 0x3b0   :  { %v3067_v17 = vpop.eup %3066  ;;  %2780 = vmatprep.mubr.msk.f32.mxu0 %vm593_vm3, %v3065_v16 }
 0x3b1   :  { %2781 = vmatmul.mubr.msk.f32.vlgmr.msra.gmra.mxu0 %vm593_vm3, %v3067_v17 }
 0x3b2   :  { %2795 = vmatpush3.msra.mxu0 %v852_v6  ;;  %2802 = vmatprep.mubr.msk.f32.mxu0 %vm593_vm3, %v3061_v4 }
 0x3b3   :  { %2796 = vmatprep.subr.mxu0 %v851_v18 }
 0x3b4   :  { %2797 = vmatpush3.msra.mxu0 %v851_v18  ;;  %v1505_v18 = vld [vmem:[%s3899_s13 + $0x68] sm:$0xff] }
 0x3b5   :  { %2798 = vmatprep.subr.mxu0 %v850_v19 }
 0x3b6   :  { %2799 = vmatpush3.msra.mxu0 %v850_v19  ;;  %v1504_v19 = vld [vmem:[%s3899_s13 + $0x60] sm:$0xff] }
 0x3b7   :  { %2800 = vmatprep.subr.mxu0 %v849_v20 }
 0x3b8   :  { %2801 = vmatpush3.msra.mxu0 %v849_v20  ;;  %v1503_v20 = vld [vmem:[%s3899_s13 + $0x58] sm:$0xff] }
 0x3b9   :  { %2803 = vmatmul.mubr.msk.f32.vlgmr.msra.gmra.mxu0 %vm593_vm3, %v3063_v5  ;;  %2836 = vmatprep.subr.mxu0 %v974_v21 }
 0x3ba   :  { %2805 = vmatprep.mubr.msk.f32.mxu0 %vm593_vm3, %v3065_v16  ;;  %2837 = vmatpush3.msra.mxu0 %v974_v21  ;;  %v1507_v16 = vld [vmem:[%s3899_s13 + $0x78] sm:$0xff] }
 0x3bb   :  { %2838 = vmatprep.subr.mxu0 %v973_v22 }
 0x3bc   :  { %2839 = vmatpush3.msra.mxu0 %v973_v22 }
 0x3bd   :  { %2806 = vmatmul.mubr.msk.f32.gmra.mxu0 %vm593_vm3, %v3067_v17  ;;  %2840 = vmatprep.subr.mxu0 %v972_v23  ;;  %v1506_v17 = vld [vmem:[%s3899_s13 + $0x70] sm:$0xff] }
 0x3be   :  { %2841 = vmatpush3.msra.mxu0 %v972_v23 }
 0x3bf   :  { %2842 = vmatprep.subr.mxu0 %v971_v24 }
 0x3c0   :  { %2843 = vmatpush3.msra.mxu0 %v971_v24 }
 0x471   :  { %v2782_v25 = vpop.f32.mrf.mxu0 }
 0x472   :  { %v761_v26 = vadd.f32 %v2782_v25, %v574_v63  ;;  %v1498_v25 = vld [vmem:[%s3899_s13 + $0x30] sm:$0xff] }
 0x473   :  { %v751_v27 = vpop.f32.mrf.mxu0 }
 0x474   :  { %v760_v28 = vadd.f32 %v751_v27, %v569_v1  ;;  %v1496_v27 = vld [vmem:[%s3899_s13 + $0x20] sm:$0xff] }
 0x476   :  { %3068 = vtanh.f32 %v760_v28  ;;  %v1495_v28 = vld [vmem:[%s3899_s13 + $0x18] sm:$0xff] }
 0x477   :  { %3070 = vtanh.f32 %v761_v26  ;;  %v1497_v26 = vld [vmem:[%s3899_s13 + $0x28] sm:$0xff] }
 0x479   :  { %v2804_v30 = vpop.f32.mrf.mxu0 }
 0x47a   :  { %v938_v31 = vadd.f32 %v2804_v30, %v3604_v29 }
 0x47b   :  { %v932_v32 = vpop.f32.mrf.mxu0 }
 0x47c   :  { %v933_v33 = vadd.f32 %v3604_v29, %v932_v32 }
 0x47d   :  { %v2807_v41 = vpop.f32.mrf.mxu0 }
 0x47e   :  { %3072 = vtanh.f32 %v933_v33  ;;  %v948_v46 = vadd.f32 %v2807_v41, %v3604_v29  ;;  %v1349_v41 = vld [vmem:[%s3897_s11 + $0x10] sm:$0xff] }
 0x47f   :  { %3074 = vtanh.f32 %v938_v31  ;;  %v942_v45 = vpop.f32.mrf.mxu0 }
 0x480   :  { %v943_v48 = vadd.f32 %v3604_v29, %v942_v45  ;;  %v1353_v45 = vld [vmem:[%s3897_s11 + $0x30] sm:$0xff] }
 0x483   :  { %v3069_v34 = vpop.eup %3068 }
 0x484   :  { %v3071_v35 = vpop.eup %3070  ;;  %2791 = vmatprep.mubr.msk.f32.mxu1 %vm593_vm3, %v3069_v34  ;;  %2808 = vmatprep.mubr.msk.f32.mxu0 %vm593_vm3, %v3069_v34 }
 0x485   :  { %2792 = vmatmul.mubr.msk.f32.vlgmr.msra.gmra.mxu1 %vm593_vm3, %v3071_v35  ;;  %2809 = vmatmul.mubr.msk.f32.gmra.mxu0 %vm593_vm3, %v3071_v35 }
 0x486   :  { %2815 = vmatpush3.msra.mxu1 %v974_v21 }
 0x487   :  { %2816 = vmatprep.subr.mxu1 %v973_v22 }
 0x488   :  { %2817 = vmatpush3.msra.mxu1 %v973_v22 }
 0x489   :  { %2818 = vmatprep.subr.mxu1 %v972_v23 }
 0x48a   :  { %2819 = vmatpush3.msra.mxu1 %v972_v23 }
 0x48b   :  { %v3073_v36 = vpop.eup %3072  ;;  %2820 = vmatprep.subr.mxu1 %v971_v24 }
 0x48c   :  { %v3075_v37 = vpop.eup %3074  ;;  %2821 = vmatpush3.msra.mxu1 %v971_v24  ;;  %2822 = vmatprep.mubr.msk.f32.mxu1 %vm593_vm3, %v3073_v36 }
 0x48d   :  { %2823 = vmatmul.mubr.msk.f32.vlgmr.msra.gmra.mxu1 %vm593_vm3, %v3075_v37  ;;  %2825 = vmatprep.subr.mxu1 %v974_v21 }
 0x48e   :  { %2826 = vmatpush3.msra.mxu1 %v974_v21  ;;  %v1502_v21 = vld [vmem:[%s3899_s13 + $0x50] sm:$0xff] }
 0x48f   :  { %2827 = vmatprep.subr.mxu1 %v973_v22 }
 0x490   :  { %2828 = vmatpush3.msra.mxu1 %v973_v22  ;;  %v1501_v22 = vld [vmem:[%s3899_s13 + $0x48] sm:$0xff] }
 0x491   :  { %2829 = vmatprep.subr.mxu1 %v972_v23 }
 0x492   :  { %2830 = vmatpush3.msra.mxu1 %v972_v23  ;;  %v1500_v23 = vld [vmem:[%s3899_s13 + $0x40] sm:$0xff] }
 0x493   :  { %2831 = vmatprep.subr.mxu1 %v971_v24 }
 0x494   :  { %2832 = vmatpush3.msra.mxu1 %v971_v24  ;;  %v1499_v24 = vld [vmem:[%s3899_s13 + $0x38] sm:$0xff] }
 0x495   :  { %2847 = vmatprep.subr.mxu1 %v1235_v38 }
 0x545   :  { %v2793_v39 = vpop.f32.mrf.mxu1  ;;  %v2810_v59 = vpop.f32.mrf.mxu0 }
 0x546   :  { %v846_v42 = vadd.f32 %v2793_v39, %v3587_v3  ;;  %v958_v61 = vadd.f32 %v2810_v59, %v3604_v29  ;;  %v1493_v39 = vld [vmem:[%s3899_s13 + $0x8] sm:$0xff] }
 0x547   :  { %v836_v43 = vpop.f32.mrf.mxu1  ;;  %v952_v60 = vpop.f32.mrf.mxu0 }
 0x548   :  { %v845_v44 = vadd.f32 %v836_v43, %v579_v40  ;;  %v953_v63 = vadd.f32 %v3604_v29, %v952_v60  ;;  %v1492_v40 = vld [vmem:[%s3899_s13] sm:$0xff]  ;;  %v1360_v60 = vld [vmem:[%s3898_s12 + $0x28] sm:$0xff] }
 0x549   :  { %v1351_v43 = vld [vmem:[%s3897_s11 + $0x20] sm:$0xff] }
 0x54a   :  { %3076 = vtanh.f32 %v845_v44  ;;  %v1352_v44 = vld [vmem:[%s3897_s11 + $0x28] sm:$0xff] }
 0x54b   :  { %3078 = vtanh.f32 %v846_v42  ;;  %v1350_v42 = vld [vmem:[%s3897_s11 + $0x18] sm:$0xff] }
 0x54d   :  { %v2824_v47 = vpop.f32.mrf.mxu1 }
 0x54e   :  { %v1059_v49 = vadd.f32 %v2824_v47, %v948_v46  ;;  %v1354_v46 = vld [vmem:[%s3897_s11 + $0x38] sm:$0xff] }
 0x54f   :  { %v1049_v50 = vpop.f32.mrf.mxu1 }
 0x550   :  { %v1058_v51 = vadd.f32 %v1049_v50, %v943_v48  ;;  %v1355_v48 = vld [vmem:[%s3898_s12] sm:$0xff] }
 0x552   :  { %3080 = vtanh.f32 %v1058_v51 }
 0x553   :  { %3082 = vtanh.f32 %v1059_v49  ;;  %v1356_v49 = vld [vmem:[%s3898_s12 + $0x8] sm:$0xff] }
 0x557   :  { %v3077_v52 = vpop.eup %3076 }
 0x558   :  { %v3079_v53 = vpop.eup %3078  ;;  %2811 = vmatprep.mubr.msk.f32.mxu0 %vm593_vm3, %v3077_v52 }
 0x559   :  { %2812 = vmatmul.mubr.msk.f32.gmra.mxu0 %vm593_vm3, %v3079_v53  ;;  %v1358_v53 = vld [vmem:[%s3898_s12 + $0x18] sm:$0xff] }
 0x55f   :  { %v3081_v54 = vpop.eup %3080 }
 0x560   :  { %v3083_v55 = vpop.eup %3082  ;;  %2833 = vmatprep.mubr.msk.f32.mxu1 %vm593_vm3, %v3081_v54 }
 0x561   :  { %2834 = vmatmul.mubr.msk.f32.vlgmr.msra.gmra.mxu1 %vm593_vm3, %v3083_v55 }
 0x562   :  { %2848 = vmatpush3.msra.mxu1 %v1235_v38  ;;  %2855 = vmatprep.mubr.msk.f32.mxu1 %vm593_vm3, %v3073_v36  ;;  %v1494_v38 = vld [vmem:[%s3899_s13 + $0x10] sm:$0xff] }
 0x563   :  { %2849 = vmatprep.subr.mxu1 %v1234_v56 }
 0x564   :  { %2850 = vmatpush3.msra.mxu1 %v1234_v56  ;;  %v3734_v56 = vld [vmem:[#allocation9 + $0x18] sm:$0xff] }
 0x565   :  { %2851 = vmatprep.subr.mxu1 %v1233_v57 }
 0x566   :  { %2852 = vmatpush3.msra.mxu1 %v1233_v57 }
 0x567   :  { %2853 = vmatprep.subr.mxu1 %v1232_v58 }
 0x568   :  { %2854 = vmatpush3.msra.mxu1 %v1232_v58  ;;  %v1357_v58 = vld [vmem:[%s3898_s12 + $0x10] sm:$0xff] }
 0x569   :  { %2856 = vmatmul.mubr.msk.f32.vlgmr.msra.gmra.mxu1 %vm593_vm3, %v3075_v37  ;;  %2895 = vmatprep.subr.mxu1 %v1507_v16  ;;  %v1348_v37 = vld [vmem:[%s3897_s11 + $0x8] sm:$0xff] }
 0x56a   :  { %2858 = vmatprep.mubr.msk.f32.mxu1 %vm593_vm3, %v3081_v54  ;;  %2896 = vmatpush3.msra.mxu1 %v1507_v16 }
 0x56b   :  { %2897 = vmatprep.subr.mxu1 %v1506_v17 }
 0x56c   :  { %2898 = vmatpush3.msra.mxu1 %v1506_v17 }
 0x56d   :  { %2859 = vmatmul.mubr.msk.f32.gmra.mxu1 %vm593_vm3, %v3083_v55  ;;  %2899 = vmatprep.subr.mxu1 %v1505_v18 }
 0x56e   :  { %2900 = vmatpush3.msra.mxu1 %v1505_v18 }
 0x56f   :  { %2901 = vmatprep.subr.mxu1 %v1504_v19 }
 0x570   :  { %2902 = vmatpush3.msra.mxu1 %v1504_v19 }
 0x571   :  { %2903 = vmatprep.subr.mxu1 %v1503_v20 }
 0x572   :  { %2904 = vmatpush3.msra.mxu1 %v1503_v20 }
 0x573   :  { %2905 = vmatprep.subr.mxu1 %v1502_v21 }
 0x574   :  { %2906 = vmatpush3.msra.mxu1 %v1502_v21 }
 0x575   :  { %2907 = vmatprep.subr.mxu1 %v1501_v22 }
 0x576   :  { %2908 = vmatpush3.msra.mxu1 %v1501_v22 }
 0x577   :  { %2909 = vmatprep.subr.mxu1 %v1500_v23 }
 0x578   :  { %2910 = vmatpush3.msra.mxu1 %v1500_v23 }
 0x579   :  { %2911 = vmatprep.subr.mxu1 %v1499_v24 }
 0x57a   :  { %2912 = vmatpush3.msra.mxu1 %v1499_v24 }
 0x57b   :  { %2913 = vmatprep.subr.mxu1 %v1498_v25 }
 0x57c   :  { %2914 = vmatpush3.msra.mxu1 %v1498_v25 }
 0x57d   :  { %2915 = vmatprep.subr.mxu1 %v1497_v26 }
 0x57e   :  { %2916 = vmatpush3.msra.mxu1 %v1497_v26 }
 0x57f   :  { %2917 = vmatprep.subr.mxu1 %v1496_v27 }
 0x580   :  { %2918 = vmatpush3.msra.mxu1 %v1496_v27 }
 0x581   :  { %2919 = vmatprep.subr.mxu1 %v1495_v28 }
 0x582   :  { %2920 = vmatpush3.msra.mxu1 %v1495_v28 }
 0x583   :  { %2921 = vmatprep.subr.mxu1 %v1494_v38 }
 0x584   :  { %2922 = vmatpush3.msra.mxu1 %v1494_v38 }
 0x585   :  { %2923 = vmatprep.subr.mxu1 %v1493_v39 }
 0x586   :  { %2924 = vmatpush3.msra.mxu1 %v1493_v39 }
 0x587   :  { %2925 = vmatprep.subr.mxu1 %v1492_v40 }
 0x588   :  { %2926 = vmatpush3.msra.mxu1 %v1492_v40 }
 0x619   :  { %v2813_v5 = vpop.f32.mrf.mxu0 }
 0x61a   :  { %v968_v7 = vadd.f32 %v2813_v5, %v3604_v29 }
 0x61b   :  { %v962_v6 = vpop.f32.mrf.mxu0 }
 0x61c   :  { %v963_v9 = vadd.f32 %v3604_v29, %v962_v6  ;;  %v1362_v6 = vld [vmem:[%s3898_s12 + $0x38] sm:$0xff] }
 0x621   :  { %v2835_v62 = vpop.f32.mrf.mxu1 }
 0x622   :  { %v1144_v0 = vadd.f32 %v2835_v62, %v958_v61  ;;  %v3745_v61 = vld [vmem:[#allocation9 + $0x10] sm:$0xff] }
 0x623   :  { %v1134_v1 = vpop.f32.mrf.mxu1 }
 0x624   :  { %v1143_v2 = vadd.f32 %v1134_v1, %v953_v63  ;;  %v1359_v63 = vld [vmem:[%s3898_s12 + $0x20] sm:$0xff]  ;;  %v1884_v1 = vld [vmem:[#allocation10 + $0x18] sm:$0xff] }
 0x625   :  { %2972 = vmatprep.subr.mxu1 %v1884_v1 }
 0x626   :  { %3084 = vtanh.f32 %v1143_v2 }
 0x627   :  { %3086 = vtanh.f32 %v1144_v0  ;;  %v3751_v0 = vld [vmem:[#allocation9 + $0x8] sm:$0xff] }
 0x629   :  { %v2857_v29 = vpop.f32.mrf.mxu1 }
 0x62b   :  { %v1308_v30 = vpop.f32.mrf.mxu1 }
 0x62d   :  { %v2860_v31 = vpop.f32.mrf.mxu1 }
 0x62f   :  { %v1318_v32 = vpop.f32.mrf.mxu1 }
 0x633   :  { %v3085_v3 = vpop.eup %3084 }
 0x634   :  { %v3087_v4 = vpop.eup %3086  ;;  %2844 = vmatprep.mubr.msk.f32.mxu0 %vm593_vm3, %v3085_v3  ;;  %2861 = vmatprep.mubr.msk.f32.mxu1 %vm593_vm3, %v3085_v3 }
 0x635   :  { %2845 = vmatmul.mubr.msk.f32.vlgmr.msra.gmra.mxu0 %vm593_vm3, %v3087_v4  ;;  %2862 = vmatmul.mubr.msk.f32.gmra.mxu1 %vm593_vm3, %v3087_v4  ;;  %v1883_v4 = vld [vmem:[#allocation10 + $0x10] sm:$0xff] }
 0x636   :  { %2883 = vmatprep.mubr.msk.f32.mxu0 %vm186_vm1, %v1347_v15  ;;  %v3785_v15 = vld [vmem:[%s3901_s15] ss:$0 sm:$0xff] }
 0x6f5   :  { %v2846_v8 = vpop.f32.mrf.mxu0  ;;  %v2863_v33 = vpop.f32.mrf.mxu1 }
 0x6f6   :  { %v1229_v10 = vadd.f32 %v2846_v8, %v968_v7  ;;  %v3765_v7 = vld [vmem:[#allocation9] sm:$0xff] }
 0x6f7   :  { %v1219_v11 = vpop.f32.mrf.mxu0  ;;  %v1328_v34 = vpop.f32.mrf.mxu1 }
 0x6f8   :  { %v1228_v12 = vadd.f32 %v1219_v11, %v963_v9  ;;  %v1361_v9 = vld [vmem:[%s3898_s12 + $0x30] sm:$0xff] }
 0x6fa   :  { %3088 = vtanh.f32 %v1228_v12 }
 0x6fb   :  { %3090 = vtanh.f32 %v1229_v10  ;;  %v1882_v10 = vld [vmem:[#allocation10 + $0x8] sm:$0xff] }
 0x707   :  { %v3089_v13 = vpop.eup %3088 }
 0x708   :  { %v3091_v14 = vpop.eup %3090  ;;  %2864 = vmatprep.mubr.msk.f32.mxu1 %vm593_vm3, %v3089_v13 }
 0x709   :  { %2865 = vmatmul.mubr.msk.f32.gmra.mxu1 %vm593_vm3, %v3091_v14  ;;  %v1881_v14 = vld [vmem:[#allocation10] sm:$0xff] }
 0x7c9   :  { %v2866_v35 = vpop.f32.mrf.mxu1 }
 0x7ca   :  { %2867 = vmatprep.subr.mxu0 %v2866_v35 }
 0x7cb   :  { %v1338_v36 = vpop.f32.mrf.mxu1  ;;  %2868 = vmatpush3.msra.mxu0 %v2866_v35  ;;  %v2003_v35 = vld [vmem:[#allocation12] sm:$0xff] }
 0x7cc   :  { %2869 = vmatprep.subr.mxu0 %v1338_v36 }
 0x7cd   :  { %2870 = vmatpush3.msra.mxu0 %v1338_v36 }
 0x7ce   :  { %2871 = vmatprep.subr.mxu0 %v2863_v33 }
 0x7cf   :  { %2872 = vmatpush3.msra.mxu0 %v2863_v33  ;;  %v2005_v33 = vld [vmem:[#allocation12 + $0x10] sm:$0xff] }
 0x7d0   :  { %2873 = vmatprep.subr.mxu0 %v1328_v34 }
 0x7d1   :  { %2874 = vmatpush3.msra.mxu0 %v1328_v34  ;;  %v2004_v34 = vld [vmem:[#allocation12 + $0x8] sm:$0xff] }
 0x7d2   :  { %2875 = vmatprep.subr.mxu0 %v2860_v31 }
 0x7d3   :  { %2876 = vmatpush3.msra.mxu0 %v2860_v31 }
 0x7d4   :  { %2877 = vmatprep.subr.mxu0 %v1318_v32 }
 0x7d5   :  { %2878 = vmatpush3.msra.mxu0 %v1318_v32  ;;  %v2006_v32 = vld [vmem:[#allocation12 + $0x18] sm:$0xff] }
 0x7d6   :  { %2879 = vmatprep.subr.mxu0 %v2857_v29 }
 0x7d7   :  { %2880 = vmatpush3.msra.mxu0 %v2857_v29 }
 0x7d8   :  { %2881 = vmatprep.subr.mxu0 %v1308_v30 }
 0x7d9   :  { %2882 = vmatpush3.msra.mxu0 %v1308_v30 }
 0x7da   :  { %2884 = vmatmul.mubr.msk.f32.vlgmr.msra.gmra.mxu0 %vm186_vm1, %v1348_v37  ;;  %2939 = vmatprep.subr.mxu0 %v3734_v56 }
 0x7db   :  { %2886 = vmatprep.mubr.msk.f32.mxu0 %vm186_vm1, %v1349_v41  ;;  %2940 = vmatpush3.msra.mxu0 %v3734_v56 }
 0x7dc   :  { %2941 = vmatprep.subr.mxu0 %v3745_v61 }
 0x7dd   :  { %2942 = vmatpush3.msra.mxu0 %v3745_v61 }
 0x7de   :  { %2887 = vmatmul.mubr.msk.f32.gmra.mxu0 %vm186_vm1, %v1350_v42  ;;  %2943 = vmatprep.subr.mxu0 %v3751_v0 }
 0x7df   :  { %2889 = vmatprep.mubr.msk.f32.mxu0 %vm186_vm1, %v1351_v43  ;;  %2944 = vmatpush3.msra.mxu0 %v3751_v0 }
 0x7e0   :  { %2945 = vmatprep.subr.mxu0 %v3765_v7 }
 0x7e1   :  { %2946 = vmatpush3.msra.mxu0 %v3765_v7 }
 0x7e2   :  { %2890 = vmatmul.mubr.msk.f32.gmra.mxu0 %vm186_vm1, %v1352_v44  ;;  %2950 = vmatprep.subr.mxu0 %v3734_v56 }
 0x7e3   :  { %2892 = vmatprep.mubr.msk.f32.mxu0 %vm186_vm1, %v1353_v45  ;;  %v3819_v45 = vld [vmem:[%s3904_s18] ss:$0 sm:$0xff] }
 0x7e6   :  { %2893 = vmatmul.mubr.msk.f32.gmra.mxu0 %vm186_vm1, %v1354_v46 }
 0x89a   :  { %v2885_v47 = vpop.f32.mrf.mxu0 }
 0x89b   :  { %v3725_v52 = vadd.f32 %v2885_v47, %v1356_v49 }
 0x89c   :  { %v1453_v50 = vpop.f32.mrf.mxu0 }
 0x89d   :  { %v3723_v51 = vadd.f32 %v1453_v50, %v1355_v48 }
 0x89e   :  { %v2888_v54 = vpop.f32.mrf.mxu0 }
 0x89f   :  { %2927 = vmatprep.mubr.f32.mxu1 %v3723_v51  ;;  %v3732_v55 = vadd.f32 %v2888_v54, %v1358_v53 }
 0x8a0   :  { %2928 = vmatmul.mubr.f32.vlgmr.msra.gmra.mxu1 %v3725_v52  ;;  %v1463_v57 = vpop.f32.mrf.mxu0 }
 0x8a1   :  { %v3740_v59 = vadd.f32 %v1463_v57, %v1357_v58  ;;  %2973 = vmatpush3.msra.mxu1 %v1884_v1  ;;  %v2267_v58 = vld [vmem:[#allocation13 + $0x18] sm:$0xff] }
 0x8a2   :  { %v2891_v62 = vpop.f32.mrf.mxu0  ;;  %2974 = vmatprep.subr.mxu1 %v1883_v4 }
 0x8a3   :  { %2930 = vmatprep.mubr.f32.mxu1 %v3740_v59  ;;  %v3755_v2 = vadd.f32 %v2891_v62, %v1360_v60  ;;  %2975 = vmatpush3.msra.mxu1 %v1883_v4 }
 0x8a4   :  { %v1473_v3 = vpop.f32.mrf.mxu0  ;;  %2931 = vmatmul.mubr.f32.gmra.mxu1 %v3732_v55  ;;  %2976 = vmatprep.subr.mxu1 %v1882_v10 }
 0x8a5   :  { %v3759_v5 = vadd.f32 %v1473_v3, %v1359_v63  ;;  %2977 = vmatpush3.msra.mxu1 %v1882_v10 }
 0x8a6   :  { %v2894_v8 = vpop.f32.mrf.mxu0  ;;  %2978 = vmatprep.subr.mxu1 %v1881_v14 }
 0x8a7   :  { %2933 = vmatprep.mubr.f32.mxu1 %v3759_v5  ;;  %v3772_v11 = vadd.f32 %v2894_v8, %v1362_v6  ;;  %2979 = vmatpush3.msra.mxu1 %v1881_v14 }
 0x8a8   :  { %v1483_v12 = vpop.f32.mrf.mxu0  ;;  %2934 = vmatmul.mubr.f32.gmra.mxu1 %v3755_v2  ;;  %3014 = vmatprep.subr.mxu1 %v2006_v32 }
 0x8a9   :  { %v3776_v13 = vadd.f32 %v1483_v12, %v1361_v9 }
 0x8ab   :  { %2936 = vmatprep.mubr.f32.mxu1 %v3776_v13 }
 0x8ac   :  { %2937 = vmatmul.mubr.f32.gmra.mxu1 %v3772_v11 }
 0x960   :  { %v2929_v16 = vpop.f32.mrf.mxu1 }
 0x961   :  { %v1587_v17 = vadd.f32 %v2929_v16, %v3785_v15 }
 0x962   :  { %v1581_v18 = vpop.f32.mrf.mxu1 }
 0x963   :  { %v1582_v19 = vadd.f32 %v3785_v15, %v1581_v18  ;;  %v2266_v18 = vld [vmem:[#allocation13 + $0x10] sm:$0xff] }
 0x964   :  { %v2932_v22 = vpop.f32.mrf.mxu1 }
 0x965   :  { %3092 = vtanh.f32 %v1582_v19  ;;  %v1597_v23 = vadd.f32 %v2932_v22, %v3785_v15  ;;  %v2265_v19 = vld [vmem:[#allocation13 + $0x8] sm:$0xff] }
 0x966   :  { %3094 = vtanh.f32 %v1587_v17  ;;  %v1591_v24 = vpop.f32.mrf.mxu1 }
 0x967   :  { %v1592_v26 = vadd.f32 %v3785_v15, %v1591_v24 }
 0x968   :  { %v2935_v36 = vpop.f32.mrf.mxu1 }
 0x969   :  { %v1607_v41 = vadd.f32 %v2935_v36, %v3785_v15 }
 0x96a   :  { %v1601_v37 = vpop.f32.mrf.mxu1 }
 0x96b   :  { %v1602_v44 = vadd.f32 %v3785_v15, %v1601_v37 }
 0x96c   :  { %v2938_v38 = vpop.f32.mrf.mxu1 }
 0x96d   :  { %v1617_v60 = vadd.f32 %v2938_v38, %v3785_v15 }
 0x96e   :  { %v1611_v39 = vpop.f32.mrf.mxu1 }
 0x96f   :  { %v1612_v62 = vadd.f32 %v3785_v15, %v1611_v39 }
 0x972   :  { %v3093_v20 = vpop.eup %3092 }
 0x973   :  { %v3095_v21 = vpop.eup %3094  ;;  %2947 = vmatprep.mubr.msk.f32.mxu0 %vm593_vm3, %v3093_v20  ;;  %2980 = vmatprep.mubr.msk.f32.mxu1 %vm593_vm3, %v3093_v20  ;;  %v2264_v20 = vld [vmem:[#allocation13] sm:$0xff] }
 0x974   :  { %2948 = vmatmul.mubr.msk.f32.vlgmr.msra.gmra.mxu0 %vm593_vm3, %v3095_v21  ;;  %2981 = vmatmul.mubr.msk.f32.vlgmr.msra.gmra.mxu1 %vm593_vm3, %v3095_v21 }
 0x975   :  { %2951 = vmatpush3.msra.mxu0 %v3734_v56  ;;  %3015 = vmatpush3.msra.mxu1 %v2006_v32 }
 0x976   :  { %2952 = vmatprep.subr.mxu0 %v3745_v61  ;;  %3016 = vmatprep.subr.mxu1 %v2005_v33 }
 0x977   :  { %2953 = vmatpush3.msra.mxu0 %v3745_v61  ;;  %3017 = vmatpush3.msra.mxu1 %v2005_v33 }
 0x978   :  { %2954 = vmatprep.subr.mxu0 %v3751_v0  ;;  %3018 = vmatprep.subr.mxu1 %v2004_v34 }
 0x979   :  { %2955 = vmatpush3.msra.mxu0 %v3751_v0  ;;  %3019 = vmatpush3.msra.mxu1 %v2004_v34 }
 0x97a   :  { %2956 = vmatprep.subr.mxu0 %v3765_v7  ;;  %3020 = vmatprep.subr.mxu1 %v2003_v35 }
 0x97b   :  { %2957 = vmatpush3.msra.mxu0 %v3765_v7  ;;  %3021 = vmatpush3.msra.mxu1 %v2003_v35 }
 0x97c   :  { %2961 = vmatprep.subr.mxu0 %v3734_v56 }
 0xa34   :  { %v2949_v25 = vpop.f32.mrf.mxu0  ;;  %v2982_v40 = vpop.f32.mrf.mxu1 }
 0xa35   :  { %v1708_v27 = vadd.f32 %v2949_v25, %v1597_v23  ;;  %v1970_v50 = vadd.f32 %v2982_v40, %v3819_v45 }
 0xa36   :  { %v1698_v28 = vpop.f32.mrf.mxu0  ;;  %v1964_v42 = vpop.f32.mrf.mxu1 }
 0xa37   :  { %v1707_v29 = vadd.f32 %v1698_v28, %v1592_v26  ;;  %v1965_v48 = vadd.f32 %v3819_v45, %v1964_v42 }
 0xa39   :  { %3096 = vtanh.f32 %v1707_v29  ;;  %v2497_v29 = vld [vmem:[%s3906_s20] ss:$0 sm:$0xff] }
 0xa3a   :  { %3098 = vtanh.f32 %v1708_v27 }
 0xa46   :  { %v3097_v30 = vpop.eup %3096 }
 0xa47   :  { %v3099_v31 = vpop.eup %3098  ;;  %2958 = vmatprep.mubr.msk.f32.mxu0 %vm593_vm3, %v3097_v30  ;;  %2983 = vmatprep.mubr.msk.f32.mxu1 %vm593_vm3, %v3097_v30 }
 0xa48   :  { %2959 = vmatmul.mubr.msk.f32.vlgmr.msra.gmra.mxu0 %vm593_vm3, %v3099_v31  ;;  %2984 = vmatmul.mubr.msk.f32.gmra.mxu1 %vm593_vm3, %v3099_v31 }
 0xa49   :  { %2962 = vmatpush3.msra.mxu0 %v3734_v56 }
 0xa4a   :  { %2963 = vmatprep.subr.mxu0 %v3745_v61 }
 0xa4b   :  { %2964 = vmatpush3.msra.mxu0 %v3745_v61 }
 0xa4c   :  { %2965 = vmatprep.subr.mxu0 %v3751_v0 }
 0xa4d   :  { %2966 = vmatpush3.msra.mxu0 %v3751_v0 }
 0xa4e   :  { %2967 = vmatprep.subr.mxu0 %v3765_v7 }
 0xa4f   :  { %2968 = vmatpush3.msra.mxu0 %v3765_v7 }
 0xa50   :  { %2992 = vmatprep.subr.mxu0 %v2006_v32 }
 0xb08   :  { %v2960_v43 = vpop.f32.mrf.mxu0  ;;  %v2985_v63 = vpop.f32.mrf.mxu1 }
 0xb09   :  { %v1793_v46 = vadd.f32 %v2960_v43, %v1607_v41  ;;  %v1980_v6 = vadd.f32 %v2985_v63, %v3819_v45 }
 0xb0a   :  { %v1783_v47 = vpop.f32.mrf.mxu0  ;;  %v1974_v4 = vpop.f32.mrf.mxu1 }
 0xb0b   :  { %v1792_v49 = vadd.f32 %v1783_v47, %v1602_v44  ;;  %v1975_v8 = vadd.f32 %v3819_v45, %v1974_v4 }
 0xb0d   :  { %3100 = vtanh.f32 %v1792_v49 }
 0xb0e   :  { %3102 = vtanh.f32 %v1793_v46 }
 0xb0f   :  { %3104 = vtanh.f32 %v1965_v48 }
 0xb10   :  { %3106 = vtanh.f32 %v1970_v50 }
 0xb1a   :  { %v3101_v53 = vpop.eup %3100 }
 0xb1b   :  { %v3103_v54 = vpop.eup %3102  ;;  %2969 = vmatprep.mubr.msk.f32.mxu0 %vm593_vm3, %v3101_v53  ;;  %2986 = vmatprep.mubr.msk.f32.mxu1 %vm593_vm3, %v3101_v53 }
 0xb1c   :  { %v3105_v56 = vpop.eup %3104  ;;  %2970 = vmatmul.mubr.msk.f32.vlgmr.msra.gmra.mxu0 %vm593_vm3, %v3103_v54  ;;  %2987 = vmatmul.mubr.msk.f32.gmra.mxu1 %vm593_vm3, %v3103_v54 }
 0xb1d   :  { %2993 = vmatpush3.msra.mxu0 %v2006_v32  ;;  %3000 = vmatprep.mubr.msk.f32.mxu0 %vm593_vm3, %v3105_v56  ;;  %v3107_v57 = vpop.eup %3106 }
 0xb1e   :  { %2994 = vmatprep.subr.mxu0 %v2005_v33 }
 0xb1f   :  { %2995 = vmatpush3.msra.mxu0 %v2005_v33 }
 0xb20   :  { %2996 = vmatprep.subr.mxu0 %v2004_v34 }
 0xb21   :  { %2997 = vmatpush3.msra.mxu0 %v2004_v34 }
 0xb22   :  { %2998 = vmatprep.subr.mxu0 %v2003_v35 }
 0xb23   :  { %2999 = vmatpush3.msra.mxu0 %v2003_v35 }
 0xb24   :  { %3001 = vmatmul.mubr.msk.f32.vlgmr.msra.gmra.mxu0 %vm593_vm3, %v3107_v57  ;;  %3003 = vmatprep.subr.mxu0 %v2006_v32 }
 0xb25   :  { %3004 = vmatpush3.msra.mxu0 %v2006_v32 }
 0xb26   :  { %3005 = vmatprep.subr.mxu0 %v2005_v33 }
 0xb27   :  { %3006 = vmatpush3.msra.mxu0 %v2005_v33 }
 0xb28   :  { %3007 = vmatprep.subr.mxu0 %v2004_v34 }
 0xb29   :  { %3008 = vmatpush3.msra.mxu0 %v2004_v34 }
 0xb2a   :  { %3009 = vmatprep.subr.mxu0 %v2003_v35 }
 0xb2b   :  { %3010 = vmatpush3.msra.mxu0 %v2003_v35 }
 0xb2c   :  { %3025 = vmatprep.subr.mxu0 %v2267_v58 }
 0xbdc   :  { %v2971_v61 = vpop.f32.mrf.mxu0  ;;  %v2988_v21 = vpop.f32.mrf.mxu1 }
 0xbdd   :  { %v1878_v0 = vadd.f32 %v2971_v61, %v1617_v60  ;;  %v1990_v23 = vadd.f32 %v2988_v21, %v3819_v45 }
 0xbde   :  { %v1868_v1 = vpop.f32.mrf.mxu0  ;;  %v1984_v22 = vpop.f32.mrf.mxu1 }
 0xbdf   :  { %v1877_v3 = vadd.f32 %v1868_v1, %v1612_v62  ;;  %v1985_v25 = vadd.f32 %v3819_v45, %v1984_v22 }
 0xbe1   :  { %3108 = vtanh.f32 %v1877_v3 }
 0xbe2   :  { %3110 = vtanh.f32 %v1878_v0 }
 0xbe4   :  { %v3002_v7 = vpop.f32.mrf.mxu0 }
 0xbe5   :  { %v2091_v9 = vadd.f32 %v3002_v7, %v1980_v6 }
 0xbe6   :  { %v2081_v10 = vpop.f32.mrf.mxu0 }
 0xbe7   :  { %v2090_v12 = vadd.f32 %v2081_v10, %v1975_v8 }
 0xbe9   :  { %3112 = vtanh.f32 %v2090_v12 }
 0xbea   :  { %3114 = vtanh.f32 %v2091_v9 }
 0xbee   :  { %v3109_v14 = vpop.eup %3108 }
 0xbef   :  { %v3111_v16 = vpop.eup %3110  ;;  %2989 = vmatprep.mubr.msk.f32.mxu1 %vm593_vm3, %v3109_v14 }
 0xbf0   :  { %2990 = vmatmul.mubr.msk.f32.gmra.mxu1 %vm593_vm3, %v3111_v16 }
 0xbf6   :  { %v3113_v15 = vpop.eup %3112 }
 0xbf7   :  { %v3115_v17 = vpop.eup %3114  ;;  %3011 = vmatprep.mubr.msk.f32.mxu0 %vm593_vm3, %v3113_v15 }
 0xbf8   :  { %3012 = vmatmul.mubr.msk.f32.vlgmr.msra.gmra.mxu0 %vm593_vm3, %v3115_v17 }
 0xbf9   :  { %3026 = vmatpush3.msra.mxu0 %v2267_v58  ;;  %3033 = vmatprep.mubr.msk.f32.mxu0 %vm593_vm3, %v3105_v56 }
 0xbfa   :  { %3027 = vmatprep.subr.mxu0 %v2266_v18 }
 0xbfb   :  { %3028 = vmatpush3.msra.mxu0 %v2266_v18 }
 0xbfc   :  { %3029 = vmatprep.subr.mxu0 %v2265_v19 }
 0xbfd   :  { %3030 = vmatpush3.msra.mxu0 %v2265_v19 }
 0xbfe   :  { %3031 = vmatprep.subr.mxu0 %v2264_v20 }
 0xbff   :  { %3032 = vmatpush3.msra.mxu0 %v2264_v20 }
 0xc00   :  { %3034 = vmatmul.mubr.msk.f32.vlgmr.msra.gmra.mxu0 %vm593_vm3, %v3107_v57 }
 0xc01   :  { %3036 = vmatprep.mubr.msk.f32.mxu0 %vm593_vm3, %v3113_v15 }
 0xc04   :  { %3037 = vmatmul.mubr.msk.f32.gmra.mxu0 %vm593_vm3, %v3115_v17 }
 0xcb8   :  { %v3013_v24 = vpop.f32.mrf.mxu0 }
 0xcb9   :  { %v2176_v26 = vadd.f32 %v3013_v24, %v1990_v23 }
 0xcba   :  { %v2166_v27 = vpop.f32.mrf.mxu0 }
 0xcbb   :  { %v2175_v28 = vadd.f32 %v2166_v27, %v1985_v25 }
 0xcbd   :  { %3116 = vtanh.f32 %v2175_v28 }
 0xcbe   :  { %3118 = vtanh.f32 %v2176_v26 }
 0xcc0   :  { %v3035_v30 = vpop.f32.mrf.mxu0 }
 0xcc1   :  { %v2353_v31 = vadd.f32 %v3035_v30, %v2497_v29 }
 0xcc2   :  { %v2347_v32 = vpop.f32.mrf.mxu0 }
 0xcc3   :  { %v2387_v33 = vadd.f32 %v2353_v31, %v3725_v52  ;;  %v2348_v34 = vadd.f32 %v2497_v29, %v2347_v32 }
 0xcc4   :  { %v3038_v35 = vpop.f32.mrf.mxu0 }
 0xcc5   :  { %2395 = vst [vmem:[%s3907_s21 + $0x8] sm:$0xff] %v2387_v33  ;;  %v2386_v36 = vadd.f32 %v2348_v34, %v3723_v51  ;;  %v2363_v37 = vadd.f32 %v3038_v35, %v2497_v29  ;;  %v2991_v51 = vpop.f32.mrf.mxu1 }
 0xcc6   :  { %v2357_v38 = vpop.f32.mrf.mxu0  ;;  %v2000_v43 = vadd.f32 %v2991_v51, %v3819_v45 }
 0xcc7   :  { %2394 = vst [vmem:[%s3907_s21] sm:$0xff] %v2386_v36  ;;  %v2389_v39 = vadd.f32 %v2363_v37, %v3732_v55  ;;  %v2358_v40 = vadd.f32 %v2497_v29, %v2357_v38  ;;  %v1994_v55 = vpop.f32.mrf.mxu1 }
 0xcc8   :  { %v1995_v46 = vadd.f32 %v3819_v45, %v1994_v55 }
 0xcc9   :  { %2397 = vst [vmem:[%s3907_s21 + $0x18] sm:$0xff] %v2389_v39  ;;  %v2388_v52 = vadd.f32 %v2358_v40, %v3740_v59 }
 0xcca   :  { %v3117_v41 = vpop.eup %3116 }
 0xccb   :  { %v3119_v42 = vpop.eup %3118  ;;  %2396 = vst [vmem:[%s3907_s21 + $0x10] sm:$0xff] %v2388_v52  ;;  %3022 = vmatprep.mubr.msk.f32.mxu1 %vm593_vm3, %v3117_v41  ;;  %3039 = vmatprep.mubr.msk.f32.mxu0 %vm593_vm3, %v3117_v41 }
 0xccc   :  { %3023 = vmatmul.mubr.msk.f32.vlgmr.msra.gmra.mxu1 %vm593_vm3, %v3119_v42  ;;  %3040 = vmatmul.mubr.msk.f32.gmra.mxu0 %vm593_vm3, %v3119_v42 }
 0xd8c   :  { %v3024_v44 = vpop.f32.mrf.mxu1  ;;  %v3041_v59 = vpop.f32.mrf.mxu0 }
 0xd8d   :  { %v2373_v47 = vadd.f32 %v3041_v59, %v2497_v29  ;;  %v2261_v48 = vadd.f32 %v3024_v44, %v2000_v43 }
 0xd8e   :  { %v2251_v49 = vpop.f32.mrf.mxu1  ;;  %v2367_v50 = vpop.f32.mrf.mxu0 }
 0xd8f   :  { %v2391_v53 = vadd.f32 %v2373_v47, %v3755_v2  ;;  %v2260_v54 = vadd.f32 %v2251_v49, %v1995_v46  ;;  %v2368_v56 = vadd.f32 %v2497_v29, %v2367_v50 }
 0xd91   :  { %2399 = vst [vmem:[%s3907_s21 + $0x28] sm:$0xff] %v2391_v53  ;;  %3120 = vtanh.f32 %v2260_v54  ;;  %v2390_v57 = vadd.f32 %v2368_v56, %v3759_v5 }
 0xd92   :  { %3122 = vtanh.f32 %v2261_v48 }
 0xd93   :  { %2398 = vst [vmem:[%s3907_s21 + $0x20] sm:$0xff] %v2390_v57 }
 0xd9e   :  { %v3121_v45 = vpop.eup %3120 }
 0xd9f   :  { %v3123_v58 = vpop.eup %3122  ;;  %3042 = vmatprep.mubr.msk.f32.mxu0 %vm593_vm3, %v3121_v45 }
 0xda0   :  { %3043 = vmatmul.mubr.msk.f32.gmra.mxu0 %vm593_vm3, %v3123_v58 }
 0xe60   :  { %v3044_v2 = vpop.f32.mrf.mxu0 }
 0xe61   :  { %v2383_v60 = vadd.f32 %v3044_v2, %v2497_v29 }
 0xe62   :  { %v2377_v61 = vpop.f32.mrf.mxu0 }
 0xe63   :  { %v2393_v62 = vadd.f32 %v2383_v60, %v3772_v11  ;;  %v2378_v63 = vadd.f32 %v2497_v29, %v2377_v61 }
 0xe65   :  { %2401 = vst [vmem:[%s3907_s21 + $0x38] sm:$0xff] %v2393_v62  ;;  %v2392_v5 = vadd.f32 %v2378_v63, %v3776_v13 }
 0xe67   :  { %2400 = vst [vmem:[%s3907_s21 + $0x30] sm:$0xff] %v2392_v5 }
 0xe68   :  { %2406 = vsyncpa [#allocation3], 1 }
 0xe69   :  { %2407 = vsyncpa [#allocation5], 1 }
 0xe6a   :  { %2408 = vsyncpa [#allocation8], 1 }
 0xe6b   :  { %2409 = vsyncpa [#allocation11], 1 }
 0xe6c   :  { %2410 = vsyncpa [#allocation14], 1 }

</bundles_post_ra>
